<compile_context>
chip_gen: v7x
topology: tpu7x:2x2x1
jax: 0.10.0
libtpu: 0.0.40
codegen_flags: <defaults>
</compile_context>

<pallas_src>
import functools

import jax
import jax.numpy as jnp
from jax.experimental import pallas as pl
from jax.experimental.pallas import tpu as pltpu

# ---- module hyper-parameters (PyTorch defaults) -----------------------------
NC = 128                       # nc
K = 5                          # cube kernel size
N_SCALE = 3                    # n_scale
CF = N_SCALE * K * K * K       # flattened conv fan-in = 375
CF_PAD = 384                   # 375 padded up to a multiple of 128
X6_PAD = 8                     # [v(3), normal(3)] padded to 8 lanes
OUT_PAD = 8                    # fc4 output 3 padded to 8 lanes


def _leaky(x, slope=0.15):
    # max(x, slope*x) == leaky_relu for 0 < slope < 1; one VALU op per vreg.
    return jnp.maximum(x, slope * x)


def _round_up(n, m):
    return -(-n // m) * m


def _mxu_is_256_deep():
    """True on v6e / v7x (2x256^2 MXU); False on v5e and older (128x128)."""
    try:
        kind = jax.devices()[0].device_kind.lower()
    except Exception:
        return True
    return not any(tag in kind for tag in ("v2", "v3", "v4", "v5"))


# ----------------------------- Pallas kernels --------------------------------
def deform_kernel_merged(x6_ref, cubes_ref,
                         wbig_ref, bbig_ref, w2_ref, b2_ref,
                         w3_ref, b3_ref, w4_ref, b4_ref, o_ref):
    """v6e/v7x variant: fc1 merged into the cube matmul, fc2 is one K=256 dot."""
    bf16, f32 = jnp.bfloat16, jnp.float32

    # One [tm,384] x [384,256] matmul produces the fc2 input directly:
    #   columns   0..127 = fc1(v, normal)   (needs bias b1 + leaky)
    #   columns 128..255 = localfc(localconv(cubes))   (bias folded into b2)
    h0 = jnp.dot(cubes_ref[...], wbig_ref[...],
                 preferred_element_type=f32) + bbig_ref[...]
    col = jax.lax.broadcasted_iota(jnp.int32, h0.shape, 1)
    h0 = jnp.where(col < NC, _leaky(h0), h0)          # lane-aligned mask

    h = _leaky(jnp.dot(h0.astype(bf16), w2_ref[...],
                       preferred_element_type=f32) + b2_ref[...])
    h = _leaky(jnp.dot(h.astype(bf16), w3_ref[...],
                       preferred_element_type=f32) + b3_ref[...])
    d = jnp.tanh(jnp.dot(h.astype(bf16), w4_ref[...],
                         preferred_element_type=f32) + b4_ref[...]) * 0.1

    # Residual add: x6 cols 0..2 hold f32 coords; d cols 3..7 are exactly zero
    # (zero-padded w4/b4, tanh(0)*0.1 = 0).  Full-block unsliced store;
    # wrapper slices [:, :3].
    o_ref[...] = d + x6_ref[...]


def deform_kernel_split(x6_ref, cubes_ref,
                        w1_ref, b1_ref, weff_ref,
                        w2a_ref, w2b_ref, b2_ref,
                        w3_ref, b3_ref, w4_ref, b4_ref, o_ref):
    """v5e variant: K=128 dots are already full-depth on the 128x128 MXU."""
    bf16, f32 = jnp.bfloat16, jnp.float32
    x6 = x6_ref[...]

    x = _leaky(jnp.dot(x6.astype(bf16), w1_ref[...],
                       preferred_element_type=f32) + b1_ref[...])
    # localconv ∘ localfc folded into one matmul; its bias is folded into b2.
    xl = jnp.dot(cubes_ref[...], weff_ref[...], preferred_element_type=f32)

    h = _leaky(jnp.dot(x.astype(bf16), w2a_ref[...], preferred_element_type=f32)
               + jnp.dot(xl.astype(bf16), w2b_ref[...], preferred_element_type=f32)
               + b2_ref[...])
    h = _leaky(jnp.dot(h.astype(bf16), w3_ref[...],
                       preferred_element_type=f32) + b3_ref[...])
    d = jnp.tanh(jnp.dot(h.astype(bf16), w4_ref[...],
                         preferred_element_type=f32) + b4_ref[...]) * 0.1
    o_ref[...] = d + x6


def deform_block_pallas(x6, cubes_flat, kparams, merged, tm=2048):
    """x6: [N, 8] f32, cubes_flat: [N, 384] bf16, kparams: prepared weights."""
    N = x6.shape[0]
    # Guarantee >= 2 grid tiles (v7x has 2 TensorCores sharing the "parallel"
    # axis); costs one extra ~0.35us grid step on single-TC chips.
    tm = max(8, min(tm, _round_up(-(-N // 2), 8)))
    n_pad = _round_up(N, tm)
    if n_pad != N:                          # real meshes aren't tile-multiples
        x6 = jnp.pad(x6, ((0, n_pad - N), (0, 0)))
        cubes_flat = jnp.pad(cubes_flat, ((0, n_pad - N), (0, 0)))

    def row_spec(c):
        return pl.BlockSpec((tm, c), lambda i: (i, 0))

    def full_spec(shape):
        return pl.BlockSpec(shape, lambda i: (0, 0))

    in_specs = [row_spec(X6_PAD), row_spec(CF_PAD)] + \
               [full_spec(p.shape) for p in kparams]

    kernel = deform_kernel_merged if merged else deform_kernel_split

    # NOTE: weights could be single-buffered (pipeline_mode=pl.Buffered(1)) to
    # shave ~1 MiB, but total VMEM at tm=2048 is far below the 32 MiB budget,
    # so the default double-buffering is kept for robustness.
    out = pl.pallas_call(
        kernel,
        out_shape=jax.ShapeDtypeStruct((n_pad, OUT_PAD), jnp.float32),
        grid_spec=pltpu.PrefetchScalarGridSpec(
            num_scalar_prefetch=0,
            grid=(n_pad // tm,),
            in_specs=in_specs,
            out_specs=pl.BlockSpec((tm, OUT_PAD), lambda i: (i, 0)),
        ),
        compiler_params=pltpu.CompilerParams(
            dimension_semantics=("parallel",),   # megacore-shard vertex tiles
            vmem_limit_bytes=32 * 1024 * 1024,
        ),
    )(x6, cubes_flat, *kparams)
    return out[:N, :3]


def prepare_params(params, merged):
    """Fold/pad/cast the PyTorch-style parameters.  Call ONCE per weight
    update, not per forward."""
    w1, b1, wlc, blc, wlf, blf, w2, b2, w3, b3, w4, b4 = params
    bf = lambda a: a.astype(jnp.bfloat16)

    # fold localconv + localfc (no nonlinearity in between -> exact)
    w_eff = wlc @ wlf                                             # [375, 128]
    b_eff = blc @ wlf + blf                                       # [1, 128]
    # fold the xl bias into fc2's bias: xl @ w2b + b_eff @ w2b == (xl+b_eff)@w2b
    b2p = b2 + b_eff @ w2[NC:, :]                                 # [1, 512]
    # pad fc4 output 3 -> 8 for a lane-friendlier, unsliced store
    w4p = jnp.pad(w4, ((0, 0), (0, OUT_PAD - 3)))                 # [256, 8]
    b4p = jnp.pad(b4, ((0, 0), (0, OUT_PAD - 3)))                 # [1, 8]

    if merged:
        # One [384, 256] weight: fc1 lives in rows 375..380 of columns 0..127,
        # the folded localconv∘localfc in rows 0..374 of columns 128..255.
        w_big = jnp.zeros((CF_PAD, 2 * NC), jnp.float32)
        w_big = w_big.at[:CF, NC:].set(w_eff)
        w_big = w_big.at[CF:CF + 6, :NC].set(w1)
        b_big = jnp.concatenate([b1, jnp.zeros((1, NC), jnp.float32)], axis=1)
        return [bf(w_big), b_big, bf(w2), b2p, bf(w3), b3, bf(w4p), b4p]

    # v5e-optimal split structure
    w1p = jnp.pad(w1, ((0, X6_PAD - 6), (0, 0)))                  # [8, 128]
    w_effp = jnp.pad(w_eff, ((0, CF_PAD - CF), (0, 0)))           # [384, 128]
    w2a, w2b = w2[:NC], w2[NC:]                                   # [128, 512] x2
    return [bf(w1p), b1, bf(w_effp), bf(w2a), bf(w2b), b2p,
            bf(w3), b3, bf(w4p), b4p]


# ----------------------------- plain-JAX glue --------------------------------
def compute_normal(v, f):
    # TODO(synk): compute_normal is external to the module; standard
    # area-weighted vertex normals (cross of face edges, scatter-add, normalize).
    vv, ff = v[0], f[0]
    v0, v1, v2 = vv[ff[:, 0]], vv[ff[:, 1]], vv[ff[:, 2]]
    fn = jnp.cross(v1 - v0, v2 - v0)
    vn = jnp.zeros_like(vv)
    vn = vn.at[ff[:, 0]].add(fn).at[ff[:, 1]].add(fn).at[ff[:, 2]].add(fn)
    vn = vn / (jnp.linalg.norm(vn, axis=-1, keepdims=True) + 1e-12)
    return vn[None]


def make_consts(L, W, H):
    LWHmax = float(max(L, W, H))
    rescale = jnp.array([L / LWHmax, W / LWHmax, H / LWHmax], jnp.float32)
    pyramid = jnp.stack(
        [jnp.array([L / 2 ** i, W / 2 ** i, H / 2 ** i], jnp.float32)
         for i in range(N_SCALE)], axis=0)
    lower = jnp.full((3,), (K - 1) // 2, jnp.float32)
    return LWHmax, rescale, pyramid, lower


def _round_half_away(x):
    # ties rounded away from zero (measure-zero difference vs half-to-even).
    return jnp.sign(x) * jnp.floor(jnp.abs(x) + 0.5)


def _cube_gather(v, volume, consts):
    """Per-scale KxKxK neighbourhood gather; returns list of [N, 125] f32."""
    LWHmax, rescale, pyramid, lower = consts
    N = v.shape[1]
    offs = jnp.arange(K, dtype=jnp.int32) - (K - 1) // 2
    vol_ = volume
    parts = []
    for n in range(N_SCALE):
        if n > 0:
            s = vol_.shape   # avg_pool3d(2); assumes even spatial dims like torch
            vol_ = vol_.reshape(1, 1, s[2] // 2, 2, s[3] // 2, 2,
                                s[4] // 2, 2).mean(axis=(3, 5, 7))
        vol = vol_[0, 0]
        ind = (v[0] + rescale) * LWHmax / (2.0 ** (n + 1))
        ind = _round_half_away(ind)
        ind = jnp.maximum(jnp.minimum(ind, pyramid[n] - 3), lower)
        ind = ind.astype(jnp.int32)
        iz, iy, ix = ind[:, 2], ind[:, 1], ind[:, 0]
        a = iz[:, None, None, None] + offs[None, :, None, None]
        b = iy[:, None, None, None] + offs[None, None, :, None]
        c = ix[:, None, None, None] + offs[None, None, None, :]
        parts.append(vol[a, b, c].reshape(N, K * K * K))
    return parts


def cube_sampling_packed(v, normal, volume, consts):
    """Directly build the padded [N, 384] bf16 kernel input: cube samples in
    columns 0..374, [v, normal] in 375..380 (used by the merged-fc1 weight,
    multiplied by zero rows in the split variant), zeros elsewhere."""
    N = v.shape[1]
    parts = [p.astype(jnp.bfloat16) for p in _cube_gather(v, volume, consts)]
    parts.append(jnp.concatenate([v[0], normal[0]], axis=1).astype(jnp.bfloat16))
    parts.append(jnp.zeros((N, CF_PAD - CF - 6), jnp.bfloat16))
    return jnp.concatenate(parts, axis=1)


def deform_block_forward(v, f, volume, kparams, consts, merged, tm=2048):
    N = v.shape[1]
    normal = compute_normal(v, f)
    # coords live (in f32) in the first 3 columns of x6 — residual source.
    x6 = jnp.concatenate(
        [v[0], normal[0], jnp.zeros((N, X6_PAD - 6), jnp.float32)], axis=1)
    cubes_flat = cube_sampling_packed(v, normal, volume, consts)
    out = deform_block_pallas(x6, cubes_flat, kparams, merged, tm=tm)  # [N, 3]
    return out[None]                                                   # [1, N, 3]


# pure-JAX f32 reference of the deformation d = tanh(fc4(...))*0.1 (no residual)
def deform_mlp_ref_d(x6_in, cubes_flat_f32, params):
    w1, b1, wlc, blc, wlf, blf, w2, b2, w3, b3, w4, b4 = params
    lk = lambda t: jnp.where(t >= 0, t, 0.15 * t)
    x = lk(x6_in @ w1 + b1)
    xl = cubes_flat_f32 @ wlc + blc
    xl = xl @ wlf + blf
    h = jnp.concatenate([x, xl], axis=-1)
    h = lk(h @ w2 + b2)
    h = lk(h @ w3 + b3)
    return jnp.tanh(h @ w4 + b4) * 0.1


def init_params(key):
    ks = jax.random.split(key, 6)

    def lin(k, fan_in, fan_out):
        bound = 1.0 / float(fan_in) ** 0.5
        kw, kb = jax.random.split(k)
        w = jax.random.uniform(kw, (fan_in, fan_out), jnp.float32, -bound, bound)
        b = jax.random.uniform(kb, (1, fan_out), jnp.float32, -bound, bound)
        return w, b

    w1, b1 = lin(ks[0], 6, NC)            # fc1
    wlc, blc = lin(ks[1], CF, NC)         # localconv weight flattened [CF, nc]
    wlf, blf = lin(ks[2], NC, NC)         # localfc
    w2, b2 = lin(ks[3], 2 * NC, 4 * NC)   # fc2
    w3, b3 = lin(ks[4], 4 * NC, 2 * NC)   # fc3
    w4, b4 = lin(ks[5], 2 * NC, 3)        # fc4
    return [w1, b1, wlc, blc, wlf, blf, w2, b2, w3, b3, w4, b4]


if __name__ == "__main__":
    key = jax.random.PRNGKey(0)
    k_v, k_f, k_vol, k_p = jax.random.split(key, 4)

    N, M = 256, 512                # vertices, faces
    L = W = H = 32                 # volume size

    v = jax.random.uniform(k_v, (1, N, 3), jnp.float32, -0.9, 0.9)
    f = jax.random.randint(k_f, (1, M, 3), 0, N, dtype=jnp.int32)
    volume = jax.random.uniform(k_vol, (1, 1, L, W, H), jnp.float32)

    params = init_params(k_p)
    consts = make_consts(L, W, H)

    merged = _mxu_is_256_deep()                  # K=256 chain on v6e/v7x
    kparams = prepare_params(params, merged)     # hoisted: once per weight set

    fwd = jax.jit(functools.partial(deform_block_forward, merged=merged, tm=2048))
    out = jax.block_until_ready(fwd(v, f, volume, kparams, consts))
    assert out.shape == (1, N, 3)

    # validate the deformation (out - coord) against an f32 reference
    normal = compute_normal(v, f)
    x6_in = jnp.concatenate([v, normal], axis=2)[0]
    cubes_f32 = jnp.concatenate(_cube_gather(v, volume, consts), axis=1)
    d_ref = deform_mlp_ref_d(x6_in, cubes_f32, params)
    d_ker = out[0] - v[0]
    err = float(jnp.max(jnp.abs(d_ker - d_ref)))
    assert err < 1e-2, f"deformation mismatch: {err}"

    print("KERNEL_OK")
</pallas_src>

<mosaic_0001>
module attributes {stable_mosaic.version = 11 : i64} {
  func.func @deform_kernel_merged(%arg0: i32, %arg1: memref<128x8xf32, #tpu.memory_space<vmem>>, %arg2: memref<128x384xbf16, #tpu.memory_space<vmem>>, %arg3: memref<384x256xbf16, #tpu.memory_space<vmem>>, %arg4: memref<1x256xf32, #tpu.memory_space<vmem>>, %arg5: memref<256x512xbf16, #tpu.memory_space<vmem>>, %arg6: memref<1x512xf32, #tpu.memory_space<vmem>>, %arg7: memref<512x256xbf16, #tpu.memory_space<vmem>>, %arg8: memref<1x256xf32, #tpu.memory_space<vmem>>, %arg9: memref<256x8xbf16, #tpu.memory_space<vmem>>, %arg10: memref<1x8xf32, #tpu.memory_space<vmem>>, %arg11: memref<128x8xf32, #tpu.memory_space<vmem>>) attributes {dimension_semantics = [#tpu.dimension_semantics<parallel>], iteration_bounds = array<i64: 2>, scalar_prefetch = 0 : i64, scratch_operands = 0 : i64, tpu.core_type = #tpu.core_type<tc>, window_params = [{transform_indices = @transform_0, window_bounds = array<i64: 128, 8>}, {transform_indices = @transform_1, window_bounds = array<i64: 128, 384>}, {pipeline_mode = #tpu.pipeline_mode<synchronous>, transform_indices = @transform_2, window_bounds = array<i64: 384, 256>}, {pipeline_mode = #tpu.pipeline_mode<synchronous>, transform_indices = @transform_3, window_bounds = array<i64: 1, 256>}, {pipeline_mode = #tpu.pipeline_mode<synchronous>, transform_indices = @transform_4, window_bounds = array<i64: 256, 512>}, {pipeline_mode = #tpu.pipeline_mode<synchronous>, transform_indices = @transform_5, window_bounds = array<i64: 1, 512>}, {pipeline_mode = #tpu.pipeline_mode<synchronous>, transform_indices = @transform_6, window_bounds = array<i64: 512, 256>}, {pipeline_mode = #tpu.pipeline_mode<synchronous>, transform_indices = @transform_7, window_bounds = array<i64: 1, 256>}, {pipeline_mode = #tpu.pipeline_mode<synchronous>, transform_indices = @transform_8, window_bounds = array<i64: 256, 8>}, {pipeline_mode = #tpu.pipeline_mode<synchronous>, transform_indices = @transform_9, window_bounds = array<i64: 1, 8>}, {transform_indices = @transform_10, window_bounds = array<i64: 128, 8>}]} {
    %c0 = arith.constant 0 : index
    %c0_0 = arith.constant 0 : index
    %0 = vector.load %arg2[%c0, %c0_0] : memref<128x384xbf16, #tpu.memory_space<vmem>>, vector<128x384xbf16>
    %c0_1 = arith.constant 0 : index
    %c0_2 = arith.constant 0 : index
    %1 = vector.load %arg3[%c0_1, %c0_2] : memref<384x256xbf16, #tpu.memory_space<vmem>>, vector<384x256xbf16>
    %cst = arith.constant dense<0.000000e+00> : vector<128x256xf32>
    %2 = tpu.matmul %0, %1, %cst {dimension_numbers = #tpu.dot_dimension_numbers<[1], [0], [0], [1], [0, 0, 1, 1], [], []>} : vector<128x384xbf16>, vector<384x256xbf16>, vector<128x256xf32> -> vector<128x256xf32>
    %c0_3 = arith.constant 0 : index
    %c0_4 = arith.constant 0 : index
    %3 = vector.load %arg4[%c0_3, %c0_4] : memref<1x256xf32, #tpu.memory_space<vmem>>, vector<1x256xf32>
    %4 = vector.broadcast %3 : vector<1x256xf32> to vector<128x256xf32>
    %5 = arith.addf %2, %4 : vector<128x256xf32>
    %6 = tpu.iota {dimensions = array<i32: 1>} : vector<128x256xi32>
    %c128_i32 = arith.constant 128 : i32
    %7 = vector.broadcast %c128_i32 : i32 to vector<128x256xi32>
    %8 = arith.cmpi slt, %6, %7 : vector<128x256xi32>
    %cst_5 = arith.constant 1.500000e-01 : f32
    %9 = vector.broadcast %cst_5 : f32 to vector<128x256xf32>
    %10 = arith.mulf %9, %5 : vector<128x256xf32>
    %11 = arith.maximumf %5, %10 : vector<128x256xf32>
    %12 = arith.select %8, %11, %5 : vector<128x256xi1>, vector<128x256xf32>
    %13 = arith.truncf %12 : vector<128x256xf32> to vector<128x256xbf16>
    %c0_6 = arith.constant 0 : index
    %c0_7 = arith.constant 0 : index
    %14 = vector.load %arg5[%c0_6, %c0_7] : memref<256x512xbf16, #tpu.memory_space<vmem>>, vector<256x512xbf16>
    %cst_8 = arith.constant dense<0.000000e+00> : vector<128x512xf32>
    %15 = tpu.matmul %13, %14, %cst_8 {dimension_numbers = #tpu.dot_dimension_numbers<[1], [0], [0], [1], [0, 0, 1, 1], [], []>} : vector<128x256xbf16>, vector<256x512xbf16>, vector<128x512xf32> -> vector<128x512xf32>
    %c0_9 = arith.constant 0 : index
    %c0_10 = arith.constant 0 : index
    %16 = vector.load %arg6[%c0_9, %c0_10] : memref<1x512xf32, #tpu.memory_space<vmem>>, vector<1x512xf32>
    %17 = vector.broadcast %16 : vector<1x512xf32> to vector<128x512xf32>
    %18 = arith.addf %15, %17 : vector<128x512xf32>
    %cst_11 = arith.constant 1.500000e-01 : f32
    %19 = vector.broadcast %cst_11 : f32 to vector<128x512xf32>
    %20 = arith.mulf %19, %18 : vector<128x512xf32>
    %21 = arith.maximumf %18, %20 : vector<128x512xf32>
    %22 = arith.truncf %21 : vector<128x512xf32> to vector<128x512xbf16>
    %c0_12 = arith.constant 0 : index
    %c0_13 = arith.constant 0 : index
    %23 = vector.load %arg7[%c0_12, %c0_13] : memref<512x256xbf16, #tpu.memory_space<vmem>>, vector<512x256xbf16>
    %cst_14 = arith.constant dense<0.000000e+00> : vector<128x256xf32>
    %24 = tpu.matmul %22, %23, %cst_14 {dimension_numbers = #tpu.dot_dimension_numbers<[1], [0], [0], [1], [0, 0, 1, 1], [], []>} : vector<128x512xbf16>, vector<512x256xbf16>, vector<128x256xf32> -> vector<128x256xf32>
    %c0_15 = arith.constant 0 : index
    %c0_16 = arith.constant 0 : index
    %25 = vector.load %arg8[%c0_15, %c0_16] : memref<1x256xf32, #tpu.memory_space<vmem>>, vector<1x256xf32>
    %26 = vector.broadcast %25 : vector<1x256xf32> to vector<128x256xf32>
    %27 = arith.addf %24, %26 : vector<128x256xf32>
    %cst_17 = arith.constant 1.500000e-01 : f32
    %28 = vector.broadcast %cst_17 : f32 to vector<128x256xf32>
    %29 = arith.mulf %28, %27 : vector<128x256xf32>
    %30 = arith.maximumf %27, %29 : vector<128x256xf32>
    %31 = arith.truncf %30 : vector<128x256xf32> to vector<128x256xbf16>
    %c0_18 = arith.constant 0 : index
    %c0_19 = arith.constant 0 : index
    %32 = vector.load %arg9[%c0_18, %c0_19] : memref<256x8xbf16, #tpu.memory_space<vmem>>, vector<256x8xbf16>
    %cst_20 = arith.constant dense<0.000000e+00> : vector<128x8xf32>
    %33 = tpu.matmul %31, %32, %cst_20 {dimension_numbers = #tpu.dot_dimension_numbers<[1], [0], [0], [1], [0, 0, 1, 1], [], []>} : vector<128x256xbf16>, vector<256x8xbf16>, vector<128x8xf32> -> vector<128x8xf32>
    %c0_21 = arith.constant 0 : index
    %c0_22 = arith.constant 0 : index
    %34 = vector.load %arg10[%c0_21, %c0_22] : memref<1x8xf32, #tpu.memory_space<vmem>>, vector<1x8xf32>
    %35 = vector.broadcast %34 : vector<1x8xf32> to vector<128x8xf32>
    %36 = arith.addf %33, %35 : vector<128x8xf32>
    %37 = math.tanh %36 : vector<128x8xf32>
    %cst_23 = arith.constant 1.000000e-01 : f32
    %38 = vector.broadcast %cst_23 : f32 to vector<128x8xf32>
    %39 = arith.mulf %37, %38 : vector<128x8xf32>
    %c0_24 = arith.constant 0 : index
    %c0_25 = arith.constant 0 : index
    %40 = vector.load %arg1[%c0_24, %c0_25] : memref<128x8xf32, #tpu.memory_space<vmem>>, vector<128x8xf32>
    %41 = arith.addf %39, %40 : vector<128x8xf32>
    %c0_26 = arith.constant 0 : index
    %c0_27 = arith.constant 0 : index
    %42 = vector.load %arg11[%c0_26, %c0_27] : memref<128x8xf32, #tpu.memory_space<vmem>>, vector<128x8xf32>
    tpu.vector_store %arg11[%c0_26, %c0_27], %41 {strides = array<i32>} : memref<128x8xf32, #tpu.memory_space<vmem>>, vector<128x8xf32>,
    return
  }
  func.func @transform_0(%arg0: i32) -> (i32, i32) {
    %c0_i32 = arith.constant 0 : i32
    %c0_i32_0 = arith.constant 0 : i32
    return %arg0, %c0_i32 : i32, i32
  }
  func.func @transform_1(%arg0: i32) -> (i32, i32) {
    %c0_i32 = arith.constant 0 : i32
    %c0_i32_0 = arith.constant 0 : i32
    return %arg0, %c0_i32 : i32, i32
  }
  func.func @transform_2(%arg0: i32) -> (i32, i32) {
    %c0_i32 = arith.constant 0 : i32
    %c0_i32_0 = arith.constant 0 : i32
    %c0_i32_1 = arith.constant 0 : i32
    return %c0_i32, %c0_i32_0 : i32, i32
  }
  func.func @transform_3(%arg0: i32) -> (i32, i32) {
    %c0_i32 = arith.constant 0 : i32
    %c0_i32_0 = arith.constant 0 : i32
    %c0_i32_1 = arith.constant 0 : i32
    return %c0_i32, %c0_i32_0 : i32, i32
  }
  func.func @transform_4(%arg0: i32) -> (i32, i32) {
    %c0_i32 = arith.constant 0 : i32
    %c0_i32_0 = arith.constant 0 : i32
    %c0_i32_1 = arith.constant 0 : i32
    return %c0_i32, %c0_i32_0 : i32, i32
  }
  func.func @transform_5(%arg0: i32) -> (i32, i32) {
    %c0_i32 = arith.constant 0 : i32
    %c0_i32_0 = arith.constant 0 : i32
    %c0_i32_1 = arith.constant 0 : i32
    return %c0_i32, %c0_i32_0 : i32, i32
  }
  func.func @transform_6(%arg0: i32) -> (i32, i32) {
    %c0_i32 = arith.constant 0 : i32
    %c0_i32_0 = arith.constant 0 : i32
    %c0_i32_1 = arith.constant 0 : i32
    return %c0_i32, %c0_i32_0 : i32, i32
  }
  func.func @transform_7(%arg0: i32) -> (i32, i32) {
    %c0_i32 = arith.constant 0 : i32
    %c0_i32_0 = arith.constant 0 : i32
    %c0_i32_1 = arith.constant 0 : i32
    return %c0_i32, %c0_i32_0 : i32, i32
  }
  func.func @transform_8(%arg0: i32) -> (i32, i32) {
    %c0_i32 = arith.constant 0 : i32
    %c0_i32_0 = arith.constant 0 : i32
    %c0_i32_1 = arith.constant 0 : i32
    return %c0_i32, %c0_i32_0 : i32, i32
  }
  func.func @transform_9(%arg0: i32) -> (i32, i32) {
    %c0_i32 = arith.constant 0 : i32
    %c0_i32_0 = arith.constant 0 : i32
    %c0_i32_1 = arith.constant 0 : i32
    return %c0_i32, %c0_i32_0 : i32, i32
  }
  func.func @transform_10(%arg0: i32) -> (i32, i32) {
    %c0_i32 = arith.constant 0 : i32
    %c0_i32_0 = arith.constant 0 : i32
    return %arg0, %c0_i32 : i32, i32
  }
}

</mosaic_0001>

<bundles_post_ra>
// kernel: deform_block_forward.1
= control target key start
LH: loop header
LB: loop body
LE: loop exit
PB: predicated region body
PF: predicated region fallthrough
CT: control target
= control target key end

     0   :  { %s3923_s13 = smov 0   ;;  %s4969_s0 = inlined_call_operand.vmem [shape: f32[256,8], index: 0, kind: input, shape index: {}]   ;;  %s4970_s1 = inlined_call_operand.vmem [shape: bf16[256,384], index: 1, kind: input, shape index: {}]   ;;  %s4971_s2 = inlined_call_operand.vmem [shape: bf16[384,256], index: 2, kind: input, shape index: {}]   ;;  %s4972_s3 = inlined_call_operand.vmem [shape: f32[1,256], index: 3, kind: input, shape index: {}]   ;;  %s4973_s4 = inlined_call_operand.vmem [shape: bf16[256,512], index: 4, kind: input, shape index: {}]   ;;  %s4974_s5 = inlined_call_operand.vmem [shape: f32[1,512], index: 5, kind: input, shape index: {}]   ;;  %s4975_s6 = inlined_call_operand.vmem [shape: bf16[512,256], index: 6, kind: input, shape index: {}]   ;;  %s4976_s7 = inlined_call_operand.vmem [shape: f32[1,256], index: 7, kind: input, shape index: {}]   ;;  %s4977_s8 = inlined_call_operand.vmem [shape: bf16[256,8], index: 8, kind: input, shape index: {}]   ;;  %s4978_s9 = inlined_call_operand.vmem [shape: f32[1,8], index: 9, kind: input, shape index: {}]   ;;  %s4979_s10 = inlined_call_operand.vmem [shape: f32[256,8], index: 10, kind: output, shape index: {}]  }
   0x1 LB: > { %s3067_s14 = sadd.s32 4294967295, %s3865_s13   ;;  %p3071_p0 = scmp.ge.s32.totalorder %s3865_s13, 1  ;;  %s3865_s13 = sphi %s3923_s13, %s20_s13  }
   0x2   : > { %p325_p1 = scmp.lt.s32.totalorder %s3865_s13, 3 }
   0x4   : > { %p326_p2 = pnand %p3071_p0, %p325_p1 }
   0x5   : > { %v3515_v0 = vld [vmem:[%s4971_s2 + $0x4] ss:$8 sps:$4 sm:$0xff] (!%p326_p2)   ;;  %v3517_v1 = vld [vmem:[%s4971_s2] ss:$8 sps:$4 sm:$0xff] (!%p326_p2)   ;;  %v3867_v2 = vmov (!%p326_p2), 0   ;;  %s3072_s21 = sshll.u32 (!%p326_p2), %s3067_s14, 4 }
   0x6   : > { %329 = sbr.rel (%p326_p2) target bundleno = 1097 (0x449), region = 60  ;;  %994 = vmatprep.mubr.bf16.mxu1 (!%p326_p2), %v3867_v2  ;;  %849 = vmatprep.subr.bf16.mxu0 (!%p326_p2), %v3515_v0  ;;  %v3518_v3 = vld [vmem:[%s4971_s2 + $0x14] ss:$8 sps:$4 sm:$0xff] (!%p326_p2)   ;;  %v3520_v4 = vld [vmem:[%s4971_s2 + $0x10] ss:$8 sps:$4 sm:$0xff] (!%p326_p2)   ;;  %p370_p3 = scmp.lt.s32.totalorder (!%p326_p2), %s3072_s21, 31 }
   0x7   : > { %850 = vmatpush1.bf16.msra.mxu0 (!%p326_p2), %v3517_v1  ;;  %v3521_v5 = vld [vmem:[%s4971_s2 + $0x24] ss:$8 sps:$4 sm:$0xff] (!%p326_p2)   ;;  %v3523_v6 = vld [vmem:[%s4971_s2 + $0x20] ss:$8 sps:$4 sm:$0xff] (!%p326_p2)   ;;  %v3524_v7 = vld [vmem:[%s4971_s2 + $0x34] ss:$8 sps:$4 sm:$0xff] (!%p326_p2)  }
   0x8   : > { %851 = vmatprep.subr.bf16.mxu0 (!%p326_p2), %v3518_v3  ;;  %v3526_v8 = vld [vmem:[%s4971_s2 + $0x30] ss:$8 sps:$4 sm:$0xff] (!%p326_p2)   ;;  %v3539_v9 = vld [vmem:[%s4971_s2 + $0x104] ss:$8 sps:$4 sm:$0xff] (!%p326_p2)   ;;  %v3543_v11 = vld [vmem:[%s4971_s2 + $0x100] ss:$8 sps:$4 sm:$0xff] (!%p326_p2)  }
   0x9   : > { %v3527_v10 = vld [vmem:[%s4971_s2 + $0x44] ss:$8 sps:$4 sm:$0xff] (!%p326_p2)   ;;  %962 = vmatprep.subr.bf16.mxu1 (!%p326_p2), %v3539_v9  ;;  %v3545_v12 = vld [vmem:[%s4971_s2 + $0x114] ss:$8 sps:$4 sm:$0xff] (!%p326_p2)   ;;  %v3529_v13 = vld [vmem:[%s4971_s2 + $0x40] ss:$8 sps:$4 sm:$0xff] (!%p326_p2)  }
   0xa   : > { %963 = vmatpush1.bf16.msra.mxu1 (!%p326_p2), %v3543_v11  ;;  %v3530_v14 = vld [vmem:[%s4971_s2 + $0x54] ss:$8 sps:$4 sm:$0xff] (!%p326_p2)   ;;  %v3549_v15 = vld [vmem:[%s4971_s2 + $0x110] ss:$8 sps:$4 sm:$0xff] (!%p326_p2)   ;;  %v3551_v16 = vld [vmem:[%s4971_s2 + $0x124] ss:$8 sps:$4 sm:$0xff] (!%p326_p2)  }
   0xb   : > { %852 = vmatpush1.bf16.msra.mxu0 (!%p326_p2), %v3520_v4  ;;  %964 = vmatprep.subr.bf16.mxu1 (!%p326_p2), %v3545_v12  ;;  %v3532_v17 = vld [vmem:[%s4971_s2 + $0x50] ss:$8 sps:$4 sm:$0xff] (!%p326_p2)   ;;  %v3555_v18 = vld [vmem:[%s4971_s2 + $0x120] ss:$8 sps:$4 sm:$0xff] (!%p326_p2)   ;;  %v3557_v19 = vld [vmem:[%s4971_s2 + $0x134] ss:$8 sps:$4 sm:$0xff] (!%p326_p2)  }
   0xc   : > { %853 = vmatprep.subr.bf16.mxu0 (!%p326_p2), %v3521_v5  ;;  %v3533_v20 = vld [vmem:[%s4971_s2 + $0x64] ss:$8 sps:$4 sm:$0xff] (!%p326_p2)   ;;  %v3561_v21 = vld [vmem:[%s4971_s2 + $0x130] ss:$8 sps:$4 sm:$0xff] (!%p326_p2)   ;;  %v3535_v22 = vld [vmem:[%s4971_s2 + $0x60] ss:$8 sps:$4 sm:$0xff] (!%p326_p2)  }
   0xd   : > { %s4981_s21 = smov (!%p370_p3, %s3072_s21), 31  ;;  %v3563_v23 = vld [vmem:[%s4971_s2 + $0x144] ss:$8 sps:$4 sm:$0xff]   ;;  %v3536_v24 = vld [vmem:[%s4971_s2 + $0x74] ss:$8 sps:$4 sm:$0xff]   ;;  %vm2982_vm0 = vcmask 64512  }
   0xe   : > { %965 = vmatpush1.bf16.msra.mxu1 %v3549_v15  ;;  %v3538_v25 = vld [vmem:[%s4971_s2 + $0x70] ss:$8 sps:$4 sm:$0xff]   ;;  %v3567_v26 = vld [vmem:[%s4971_s2 + $0x140] ss:$8 sps:$4 sm:$0xff]   ;;  %s3505_s11 = smul.u32 12, %s4981_s21  ;;  %s3073_s19 = sshll.u32 %s4981_s21, 3 }
   0xf   : > { %854 = vmatpush1.bf16.msra.mxu0 %v3523_v6  ;;  %966 = vmatprep.subr.bf16.mxu1 %v3551_v16  ;;  %v3569_v27 = vld [vmem:[%s4971_s2 + $0x154] ss:$8 sps:$4 sm:$0xff]   ;;  %v3541_v28 = vld [vmem:[%s4971_s2 + $0x84] ss:$8 sps:$4 sm:$0xff]   ;;  %v3573_v29 = vld [vmem:[%s4971_s2 + $0x150] ss:$8 sps:$4 sm:$0xff]   ;;  %s4898_s24 = scalar_lea.vmem %s4969_s0, %s3073_s19  ;;  %s4905_s26 = scalar_lea.vmem %s4979_s10, %s3073_s19 }
  0x10   : > { %855 = vmatprep.subr.bf16.mxu0 %v3524_v7  ;;  %s4025_s23 = scalar_lea.vmem %s4970_s1, %s3505_s11  ;;  %v3544_v30 = vld [vmem:[%s4971_s2 + $0x80] ss:$8 sps:$4 sm:$0xff]   ;;  %v3575_v31 = vld [vmem:[%s4971_s2 + $0x164] ss:$8 sps:$4 sm:$0xff]   ;;  %v3547_v32 = vld [vmem:[%s4971_s2 + $0x94] ss:$8 sps:$4 sm:$0xff]  }
  0x11   : > { %v3550_v33 = vld [vmem:[%s4971_s2 + $0x90] ss:$8 sps:$4 sm:$0xff]   ;;  %v3579_v35 = vld [vmem:[%s4971_s2 + $0x160] ss:$8 sps:$4 sm:$0xff]   ;;  %v3581_v36 = vld [vmem:[%s4971_s2 + $0x174] ss:$8 sps:$4 sm:$0xff]  }
  0x12   : > { %967 = vmatpush1.bf16.msra.mxu1 %v3555_v18  ;;  %v3589_v34 = vld [vmem:[%s4025_s23 + $0x4] ss:$12 sps:$4 sm:$0xff]   ;;  %v3556_v39 = vld [vmem:[%s4971_s2 + $0xa0] ss:$8 sps:$4 sm:$0xff]   ;;  %v3559_v40 = vld [vmem:[%s4971_s2 + $0xb4] ss:$8 sps:$4 sm:$0xff]  }
  0x13   : > { %856 = vmatpush1.bf16.msra.mxu0 %v3526_v8  ;;  %968 = vmatprep.subr.bf16.mxu1 %v3557_v19  ;;  %v3553_v37 = vld [vmem:[%s4971_s2 + $0xa4] ss:$8 sps:$4 sm:$0xff]   ;;  %v3585_v38 = vld [vmem:[%s4971_s2 + $0x170] ss:$8 sps:$4 sm:$0xff]   ;;  %v3590_v41 = vld [vmem:[%s4025_s23 + $0x8] ss:$12 sps:$4 sm:$0xff]  }
  0x14   : > { %857 = vmatprep.subr.bf16.mxu0 %v3527_v10  ;;  %881 = vmatprep.mubr.bf16.mxu0 %v3589_v34  ;;  %v3562_v42 = vld [vmem:[%s4971_s2 + $0xb0] ss:$8 sps:$4 sm:$0xff]   ;;  %v3565_v43 = vld [vmem:[%s4971_s2 + $0xc4] ss:$8 sps:$4 sm:$0xff]   ;;  %v3568_v44 = vld [vmem:[%s4971_s2 + $0xc0] ss:$8 sps:$4 sm:$0xff]  }
  0x15   : > { %v3571_v45 = vld [vmem:[%s4971_s2 + $0xd4] ss:$8 sps:$4 sm:$0xff]   ;;  %v3593_v46 = vld [vmem:[%s4025_s23 + $0x20] ss:$12 sps:$4 sm:$0xff]   ;;  %v3574_v47 = vld [vmem:[%s4971_s2 + $0xd0] ss:$8 sps:$4 sm:$0xff]  }
  0x16   : > { %969 = vmatpush1.bf16.msra.mxu1 %v3561_v21  ;;  %v3619_v48 = vld [vmem:[%s4973_s4] ss:$16 sps:$4 sm:$0xff]   ;;  %v3621_v49 = vld [vmem:[%s4973_s4 + $0x4] ss:$16 sps:$4 sm:$0xff]   ;;  %v3591_v62 = vld [vmem:[%s4025_s23 + $0x1c] ss:$12 sps:$4 sm:$0xff]  }
  0x17   : > { %858 = vmatpush1.bf16.msra.mxu0 %v3529_v13  ;;  %970 = vmatprep.subr.bf16.mxu1 %v3563_v23  ;;  %v3577_v50 = vld [vmem:[%s4971_s2 + $0xe4] ss:$8 sps:$4 sm:$0xff]   ;;  %v3622_v52 = vld [vmem:[%s4973_s4 + $0x20] ss:$16 sps:$4 sm:$0xff]   ;;  %v3583_v55 = vld [vmem:[%s4971_s2 + $0xf4] ss:$8 sps:$4 sm:$0xff]  }
  0x18   : > { %859 = vmatprep.subr.bf16.mxu0 %v3530_v14  ;;  %v3624_v51 = vld [vmem:[%s4973_s4 + $0x24] ss:$16 sps:$4 sm:$0xff]   ;;  %v3580_v53 = vld [vmem:[%s4971_s2 + $0xe0] ss:$8 sps:$4 sm:$0xff]   ;;  %v3586_v58 = vld [vmem:[%s4971_s2 + $0xf0] ss:$8 sps:$4 sm:$0xff]  }
  0x19   : > { %v3627_v54 = vld [vmem:[%s4973_s4 + $0x44] ss:$16 sps:$4 sm:$0xff]   ;;  %v3625_v57 = vld [vmem:[%s4973_s4 + $0x40] ss:$16 sps:$4 sm:$0xff]   ;;  %v3599_v13 = vld [vmem:[%s4025_s23 + $0x4c] ss:$12 sps:$4 sm:$0xff]  }
  0x1a   : > { %971 = vmatpush1.bf16.msra.mxu1 %v3567_v26  ;;  %v3597_v56 = vld [vmem:[%s4025_s23 + $0x38] ss:$12 sps:$4 sm:$0xff]   ;;  %v3587_v60 = vld [vmem:[%s4025_s23] ss:$12 sps:$4 sm:$0xff]   ;;  %v3601_v0 = vld [vmem:[%s4025_s23 + $0x50] ss:$12 sps:$4 sm:$0xff]  }
  0x1b   : > { %860 = vmatpush1.bf16.msra.mxu0 %v3532_v17  ;;  %972 = vmatprep.subr.bf16.mxu1 %v3569_v27  ;;  %v3630_v59 = vld [vmem:[%s4973_s4 + $0x64] ss:$16 sps:$4 sm:$0xff]   ;;  %v3628_v61 = vld [vmem:[%s4973_s4 + $0x60] ss:$16 sps:$4 sm:$0xff]   ;;  %v3607_v27 = vld [vmem:[%s4025_s23 + $0x7c] ss:$12 sps:$4 sm:$0xff]  }
  0x1c   : > { %861 = vmatprep.subr.bf16.mxu0 %v3533_v20  ;;  %v3633_v63 = vld [vmem:[%s4973_s4 + $0x84] ss:$16 sps:$4 sm:$0xff]   ;;  %v3631_v1 = vld [vmem:[%s4973_s4 + $0x80] ss:$16 sps:$4 sm:$0xff]  }
  0x1d   : > { %v3636_v3 = vld [vmem:[%s4973_s4 + $0xa4] ss:$16 sps:$4 sm:$0xff]   ;;  %v3634_v5 = vld [vmem:[%s4973_s4 + $0xa0] ss:$16 sps:$4 sm:$0xff]  }
  0x1e   : > { %973 = vmatpush1.bf16.msra.mxu1 %v3573_v29  ;;  %v3594_v4 = vld [vmem:[%s4025_s23 + $0x18] ss:$12 sps:$4 sm:$0xff]   ;;  %v3595_v6 = vld [vmem:[%s4025_s23 + $0x34] ss:$12 sps:$4 sm:$0xff]   ;;  %v3598_v11 = vld [vmem:[%s4025_s23 + $0x30] ss:$12 sps:$4 sm:$0xff]  }
  0x1f   : > { %862 = vmatpush1.bf16.msra.mxu0 %v3535_v22  ;;  %974 = vmatprep.subr.bf16.mxu1 %v3575_v31  ;;  %v3639_v7 = vld [vmem:[%s4973_s4 + $0xc4] ss:$16 sps:$4 sm:$0xff]   ;;  %v3637_v9 = vld [vmem:[%s4973_s4 + $0xc0] ss:$16 sps:$4 sm:$0xff]  }
  0x20   : > { %863 = vmatprep.subr.bf16.mxu0 %v3536_v24  ;;  %v3605_v8 = vld [vmem:[%s4025_s23 + $0x68] ss:$12 sps:$4 sm:$0xff]   ;;  %v3640_v12 = vld [vmem:[%s4973_s4 + $0xe0] ss:$16 sps:$4 sm:$0xff]   ;;  %v3613_v22 = vld [vmem:[%s4025_s23 + $0x98] ss:$12 sps:$4 sm:$0xff]  }
  0x21   : > { %v3642_v10 = vld [vmem:[%s4973_s4 + $0xe4] ss:$16 sps:$4 sm:$0xff]   ;;  %v3609_v15 = vld [vmem:[%s4025_s23 + $0x80] ss:$12 sps:$4 sm:$0xff]   ;;  %v3617_v29 = vld [vmem:[%s4025_s23 + $0xb0] ss:$12 sps:$4 sm:$0xff]  }
  0x22   : > { %975 = vmatpush1.bf16.msra.mxu1 %v3579_v35  ;;  %v3645_v14 = vld [vmem:[%s4973_s4 + $0x104] ss:$16 sps:$4 sm:$0xff]   ;;  %v3643_v16 = vld [vmem:[%s4973_s4 + $0x100] ss:$16 sps:$4 sm:$0xff]  }
  0x23   : > { %864 = vmatpush1.bf16.msra.mxu0 %v3538_v25  ;;  %976 = vmatprep.subr.bf16.mxu1 %v3581_v36  ;;  %v3648_v17 = vld [vmem:[%s4973_s4 + $0x124] ss:$16 sps:$4 sm:$0xff]   ;;  %v3646_v19 = vld [vmem:[%s4973_s4 + $0x120] ss:$16 sps:$4 sm:$0xff]  }
  0x24   : > { %865 = vmatprep.subr.bf16.mxu0 %v3541_v28  ;;  %v3602_v18 = vld [vmem:[%s4025_s23 + $0x48] ss:$12 sps:$4 sm:$0xff]   ;;  %v3603_v20 = vld [vmem:[%s4025_s23 + $0x64] ss:$12 sps:$4 sm:$0xff]   ;;  %v3606_v25 = vld [vmem:[%s4025_s23 + $0x60] ss:$12 sps:$4 sm:$0xff]  }
  0x25   : > { %v3651_v21 = vld [vmem:[%s4973_s4 + $0x144] ss:$16 sps:$4 sm:$0xff]   ;;  %v3649_v23 = vld [vmem:[%s4973_s4 + $0x140] ss:$16 sps:$4 sm:$0xff]  }
  0x26   : > { %977 = vmatpush1.bf16.msra.mxu1 %v3585_v38  ;;  %v3654_v24 = vld [vmem:[%s4973_s4 + $0x164] ss:$16 sps:$4 sm:$0xff]   ;;  %v3652_v26 = vld [vmem:[%s4973_s4 + $0x160] ss:$16 sps:$4 sm:$0xff]  }
  0x27   : > { %866 = vmatpush1.bf16.msra.mxu0 %v3544_v30  ;;  %1598 = vmatprep.subr.bf16.mxu1 %v3621_v49  ;;  %v3657_v28 = vld [vmem:[%s4973_s4 + $0x184] ss:$16 sps:$4 sm:$0xff]   ;;  %v3655_v30 = vld [vmem:[%s4973_s4 + $0x180] ss:$16 sps:$4 sm:$0xff]  }
  0x28   : > { %867 = vmatprep.subr.bf16.mxu0 %v3547_v32  ;;  %v3610_v31 = vld [vmem:[%s4025_s23 + $0x78] ss:$12 sps:$4 sm:$0xff]   ;;  %v3611_v32 = vld [vmem:[%s4025_s23 + $0x94] ss:$12 sps:$4 sm:$0xff]  }
  0x29   : > { %995 = vmatmul.mubr.bf16.vlgmr.msra.gmra.mrb[0].mxu1 %v3590_v41  ;;  %v3618_v34 = vld [vmem:[%s4025_s23 + $0xa8] ss:$12 sps:$4 sm:$0xff]   ;;  %v3658_v36 = vld [vmem:[%s4973_s4 + $0x1a0] ss:$16 sps:$4 sm:$0xff]   ;;  %v3669_v41 = vld [vmem:[%s4973_s4 + $0xc] ss:$16 sps:$4 sm:$0xff]  }
  0x2a   : > { %1004 = vmatprep.mubr.bf16.mxu1 %v3867_v2  ;;  %1599 = vmatpush1.bf16.msra.mxu1 %v3619_v48  ;;  %v3660_v35 = vld [vmem:[%s4973_s4 + $0x1a4] ss:$16 sps:$4 sm:$0xff]   ;;  %v3661_v38 = vld [vmem:[%s4973_s4 + $0x1c0] ss:$16 sps:$4 sm:$0xff]  }
  0x2b   : > { %868 = vmatpush1.bf16.msra.mxu0 %v3550_v33  ;;  %1600 = vmatprep.subr.bf16.mxu1 %v3624_v51  ;;  %v3615_v33 = vld [vmem:[%s4025_s23 + $0xac] ss:$12 sps:$4 sm:$0xff]  }
  0x2c   : > { %869 = vmatprep.subr.bf16.mxu0 %v3553_v37  ;;  %v3663_v37 = vld [vmem:[%s4973_s4 + $0x1c4] ss:$16 sps:$4 sm:$0xff]  }
  0x2e   : > { %1601 = vmatpush1.bf16.msra.mxu1 %v3622_v52 }
  0x2f   : > { %870 = vmatpush1.bf16.msra.mxu0 %v3556_v39  ;;  %1602 = vmatprep.subr.bf16.mxu1 %v3627_v54  ;;  %v3666_v39 = vld [vmem:[%s4973_s4 + $0x1e4] ss:$16 sps:$4 sm:$0xff]  }
  0x30   : > { %871 = vmatprep.subr.bf16.mxu0 %v3559_v40  ;;  %v3664_v40 = vld [vmem:[%s4973_s4 + $0x1e0] ss:$16 sps:$4 sm:$0xff]  }
  0x31   : > { %1005 = vmatmul.mubr.bf16.gmra.mrb[4].mxu1 %v3593_v46  ;;  %v471_v46 = vlaneseq }
  0x32   : > { %1014 = vmatprep.mubr.bf16.mxu1 %v3867_v2  ;;  %1603 = vmatpush1.bf16.msra.mxu1 %v3625_v57 }
  0x33   : > { %872 = vmatpush1.bf16.msra.mxu0 %v3562_v42  ;;  %1604 = vmatprep.subr.bf16.mxu1 %v3630_v59  ;;  %v4214_v49 = vshrl.u32 %v471_v46, 7  ;;  %v3675_v46 = vld [vmem:[%s4973_s4 + $0x4c] ss:$16 sps:$4 sm:$0xff]  }
  0x34   : > { %873 = vmatprep.subr.bf16.mxu0 %v3565_v43 }
  0x35   : > { %v4217_v52 = vsub.s32 0, %v4214_v49  ;;  %v4223_v54 = vsub.s32 1, %v4214_v49 }
  0x36   : > { %1605 = vmatpush1.bf16.msra.mxu1 %v3628_v61 }
  0x37   : > { %874 = vmatpush1.bf16.msra.mxu0 %v3568_v44  ;;  %1606 = vmatprep.subr.bf16.mxu1 %v3633_v63 }
  0x38   : > { %875 = vmatprep.subr.bf16.mxu0 %v3571_v45 }
  0x39   : > { %1015 = vmatmul.mubr.bf16.gmra.mrb[8].mxu1 %v3597_v56 }
  0x3a   : > { %1024 = vmatprep.mubr.bf16.mxu1 %v3867_v2  ;;  %1607 = vmatpush1.bf16.msra.mxu1 %v3631_v1 }
  0x3b   : > { %876 = vmatpush1.bf16.msra.mxu0 %v3574_v47  ;;  %1608 = vmatprep.subr.bf16.mxu1 %v3636_v3 }
  0x3c   : > { %877 = vmatprep.subr.bf16.mxu0 %v3577_v50 }
  0x3e   : > { %1609 = vmatpush1.bf16.msra.mxu1 %v3634_v5 }
  0x3f   : > { %878 = vmatpush1.bf16.msra.mxu0 %v3580_v53  ;;  %1610 = vmatprep.subr.bf16.mxu1 %v3639_v7  ;;  %v469_v53 = vld [vmem:[%s4972_s3] sm:$0x3] }
  0x40   : > { %879 = vmatprep.subr.bf16.mxu0 %v3583_v55  ;;  %v4230_v57 = vrot.slane %v469_v53, %v4217_v52  ;;  %v4235_v59 = vrot.slane %v469_v53, %v4223_v54 }
  0x41   : > { %1025 = vmatmul.mubr.bf16.gmra.mrb[12].mxu1 %v3601_v0 }
  0x42   : > { %1034 = vmatprep.mubr.bf16.mxu1 %v3867_v2  ;;  %1611 = vmatpush1.bf16.msra.mxu1 %v3637_v9 }
  0x43   : > { %880 = vmatpush1.bf16.msra.mxu0 %v3586_v58  ;;  %1612 = vmatprep.subr.bf16.mxu1 %v3642_v10 }
  0x46   : > { %882 = vmatmul.mubr.bf16.vlgmr.msra.gmra.mrb[0].mxu0 %v3587_v60  ;;  %1613 = vmatpush1.bf16.msra.mxu1 %v3640_v12 }
  0x47   : > { %891 = vmatprep.mubr.bf16.mxu0 %v3591_v62  ;;  %1614 = vmatprep.subr.bf16.mxu1 %v3645_v14 }
  0x49   : > { %1035 = vmatmul.mubr.bf16.gmra.mrb[16].mxu1 %v3605_v8 }
  0x4a   : > { %1044 = vmatprep.mubr.bf16.mxu1 %v3867_v2  ;;  %1615 = vmatpush1.bf16.msra.mxu1 %v3643_v16  ;;  %v3717_v16 = vld [vmem:[%s4975_s6 + $0x4] ss:$8 sps:$4 sm:$0xff]  }
  0x4b   : > { %1616 = vmatprep.subr.bf16.mxu1 %v3648_v17  ;;  %2380 = vmatprep.subr.bf16.mxu0 %v3717_v16 }
  0x4e   : > { %892 = vmatmul.mubr.bf16.gmra.mrb[4].mxu0 %v3594_v4  ;;  %1617 = vmatpush1.bf16.msra.mxu1 %v3646_v19 }
  0x4f   : > { %901 = vmatprep.mubr.bf16.mxu0 %v3595_v6  ;;  %1618 = vmatprep.subr.bf16.mxu1 %v3651_v21 }
  0x51   : > { %1045 = vmatmul.mubr.bf16.gmra.mrb[20].mxu1 %v3609_v15 }
  0x52   : > { %1054 = vmatprep.mubr.bf16.mxu1 %v3867_v2  ;;  %1619 = vmatpush1.bf16.msra.mxu1 %v3649_v23 }
  0x53   : > { %1620 = vmatprep.subr.bf16.mxu1 %v3654_v24 }
  0x56   : > { %902 = vmatmul.mubr.bf16.gmra.mrb[8].mxu0 %v3598_v11  ;;  %1621 = vmatpush1.bf16.msra.mxu1 %v3652_v26 }
  0x57   : > { %911 = vmatprep.mubr.bf16.mxu0 %v3599_v13  ;;  %1622 = vmatprep.subr.bf16.mxu1 %v3657_v28  ;;  %v3715_v13 = vld [vmem:[%s4975_s6] ss:$8 sps:$4 sm:$0xff]  }
  0x58   : > { %2381 = vmatpush1.bf16.msra.mxu0 %v3715_v13  ;;  %v3667_v28 = vld [vmem:[%s4973_s4 + $0x8] ss:$16 sps:$4 sm:$0xff]  }
  0x59   : > { %1055 = vmatmul.mubr.bf16.gmra.mrb[24].mxu1 %v3613_v22 }
  0x5a   : > { %1064 = vmatprep.mubr.bf16.mxu1 %v3867_v2  ;;  %1623 = vmatpush1.bf16.msra.mxu1 %v3655_v30  ;;  %v3614_v2 = vld [vmem:[%s4025_s23 + $0x90] ss:$12 sps:$4 sm:$0xff]  }
  0x5b   : > { %1624 = vmatprep.subr.bf16.mxu1 %v3660_v35 }
  0x5e   : > { %912 = vmatmul.mubr.bf16.gmra.mrb[12].mxu0 %v3602_v18  ;;  %1625 = vmatpush1.bf16.msra.mxu1 %v3658_v36  ;;  %v3720_v18 = vld [vmem:[%s4975_s6 + $0x14] ss:$8 sps:$4 sm:$0xff]  }
  0x5f   : > { %921 = vmatprep.mubr.bf16.mxu0 %v3603_v20  ;;  %1626 = vmatprep.subr.bf16.mxu1 %v3663_v37 }
  0x60   : > { %2382 = vmatprep.subr.bf16.mxu0 %v3720_v18 }
  0x61   : > { %1065 = vmatmul.mubr.bf16.gmra.mrb[28].mxu1 %v3617_v29  ;;  %v3723_v29 = vld [vmem:[%s4975_s6 + $0x24] ss:$8 sps:$4 sm:$0xff]  }
  0x62   : > { %1627 = vmatpush1.bf16.msra.mxu1 %v3661_v38 }
  0x63   : > { %1628 = vmatprep.subr.bf16.mxu1 %v3666_v39 }
  0x66   : > { %922 = vmatmul.mubr.bf16.gmra.mrb[16].mxu0 %v3606_v25  ;;  %1629 = vmatpush1.bf16.msra.mxu1 %v3664_v40  ;;  %v3718_v25 = vld [vmem:[%s4975_s6 + $0x10] ss:$8 sps:$4 sm:$0xff]  }
  0x67   : > { %931 = vmatprep.mubr.bf16.mxu0 %v3607_v27  ;;  %1711 = vmatprep.subr.bf16.mxu1 %v3669_v41  ;;  %v3721_v41 = vld [vmem:[%s4975_s6 + $0x20] ss:$8 sps:$4 sm:$0xff]  }
  0x68   : > { %2383 = vmatpush1.bf16.msra.mxu0 %v3718_v25  ;;  %v3732_v25 = vld [vmem:[%s4975_s6 + $0x54] ss:$8 sps:$4 sm:$0xff]  }
  0x69   : > { %2384 = vmatprep.subr.bf16.mxu0 %v3723_v29 }
  0x6c   : > { %2385 = vmatpush1.bf16.msra.mxu0 %v3721_v41 }
  0x6e   : > { %932 = vmatmul.mubr.bf16.gmra.mrb[20].mxu0 %v3610_v31 }
  0x6f   : > { %941 = vmatprep.mubr.bf16.mxu0 %v3611_v32 }
  0x76   : > { %942 = vmatmul.mubr.bf16.gmra.mrb[24].mxu0 %v3614_v2 }
  0x77   : > { %951 = vmatprep.mubr.bf16.mxu0 %v3615_v33  ;;  %v3672_v33 = vld [vmem:[%s4973_s4 + $0x2c] ss:$16 sps:$4 sm:$0xff]  }
  0x7e   : > { %952 = vmatmul.mubr.bf16.gmra.mrb[28].mxu0 %v3618_v34 }
  0xfc   : > { %v996_v42 = vpop.f32.mrb[0].mxu1 }
  0xfd   : > { %v998_v43 = vpop.f32.mrb[1].mxu1 }
  0xfe   : > { %v1000_v44 = vpop.f32.mrb[2].mxu1 }
  0xff   : > { %v1002_v45 = vpop.f32.mrb[3].mxu1 }
 0x104   : > { %v1006_v47 = vpop.f32.mrb[4].mxu1 }
 0x105   : > { %v1008_v48 = vpop.f32.mrb[5].mxu1 }
 0x106   : > { %v1010_v50 = vpop.f32.mrb[6].mxu1 }
 0x107   : > { %v1012_v51 = vpop.f32.mrb[7].mxu1 }
 0x10c   : > { %v4225_v55 = vpop.f32.mrb[8].mxu1 }
 0x10d   : > { %v4227_v56 = vpop.f32.mrb[9].mxu1 }
 0x10e   : > { %v4232_v58 = vpop.f32.mrb[10].mxu1 }
 0x10f   : > { %v4237_v60 = vpop.f32.mrb[11].mxu1 }
 0x114   : > { %v4242_v6 = vpop.f32.mrb[12].mxu1 }
 0x115   : > { %v4245_v9 = vpop.f32.mrb[13].mxu1 }
 0x116   : > { %v4247_v12 = vpop.f32.mrb[14].mxu1 }
 0x117   : > { %v4252_v15 = vpop.f32.mrb[15].mxu1 }
 0x119   : > { %v883_v61 = vpop.f32.mrb[0].mxu0 }
 0x11a   : > { %v884_v62 = vadd.f32 %v883_v61, %v4230_v57  ;;  %v885_v63 = vpop.f32.mrb[1].mxu0 }
 0x11b   : > { %v886_v0 = vadd.f32 %v885_v63, %v4235_v59  ;;  %v887_v1 = vpop.f32.mrb[2].mxu0  ;;  %v3724_v63 = vld [vmem:[%s4975_s6 + $0x30] ss:$8 sps:$4 sm:$0xff]  }
 0x11c   : > { %v997_v3 = vadd.f32 %v996_v42, %v884_v62  ;;  %v888_v4 = vadd.f32 %v887_v1, %v4230_v57  ;;  %v889_v5 = vpop.f32.mrb[3].mxu0  ;;  %v4280_v34 = vpop.f32.mrb[16].mxu1 }
 0x11d   : > { %v999_v7 = vadd.f32 %v998_v43, %v886_v0  ;;  %v890_v8 = vadd.f32 %v889_v5, %v4235_v59  ;;  %v4283_v37 = vpop.f32.mrb[17].mxu1  ;;  %v3670_v43 = vld [vmem:[%s4973_s4 + $0x28] ss:$16 sps:$4 sm:$0xff]  }
 0x11e   : > { %v1080_v10 = vmul.f32 0.15, %v997_v3  ;;  %v1001_v11 = vadd.f32 %v1000_v44, %v888_v4  ;;  %v4286_v40 = vpop.f32.mrb[18].mxu1  ;;  %v3729_v4 = vld [vmem:[%s4975_s6 + $0x44] ss:$8 sps:$4 sm:$0xff]  }
 0x11f   : > { %v1003_v14 = vadd.f32 %v1002_v45, %v890_v8  ;;  %v4294_v44 = vpop.f32.mrb[19].mxu1 }
 0x120   : > { %v1082_v17 = vmul.f32 0.15, %v1001_v11  ;;  %v1112_v21 = vmax.f32 %v997_v3, %v1080_v10  ;;  %v3673_v3 = vld [vmem:[%s4973_s4 + $0x48] ss:$16 sps:$4 sm:$0xff]  }
 0x121   : > { %v893_v19 = vpop.f32.mrb[4].mxu0  ;;  %v4260_v20 = vpack.c.bf16 %v1003_v14, %v999_v7 }
 0x122   : > { %v1114_v22 = vmax.f32 %v1001_v11, %v1082_v17  ;;  %v894_v23 = vadd.f32 %v893_v19, %v4230_v57  ;;  %v895_v24 = vpop.f32.mrb[5].mxu0  ;;  %v3678_v11 = vld [vmem:[%s4973_s4 + $0x6c] ss:$16 sps:$4 sm:$0xff]  }
 0x123   : > { %v896_v26 = vadd.f32 %v895_v24, %v4235_v59  ;;  %v897_v27 = vpop.f32.mrb[6].mxu0  ;;  %1630 = vmatprep.mubr.bf16.mxu1 %v4260_v20  ;;  %v3681_v24 = vld [vmem:[%s4973_s4 + $0x8c] ss:$16 sps:$4 sm:$0xff]  }
 0x124   : > { %v4274_v30 = vpack.c.bf16 %v1114_v22, %v1112_v21  ;;  %v1007_v31 = vadd.f32 %v1006_v47, %v894_v23  ;;  %v898_v32 = vadd.f32 %v897_v27, %v4230_v57  ;;  %v899_v2 = vpop.f32.mrb[7].mxu0  ;;  %v3726_v47 = vld [vmem:[%s4975_s6 + $0x34] ss:$8 sps:$4 sm:$0xff]   ;;  %v4323_v13 = vpop.f32.mrb[20].mxu1  ;;  %v3727_v21 = vld [vmem:[%s4975_s6 + $0x40] ss:$8 sps:$4 sm:$0xff]  }
 0x125   : > { %v1009_v35 = vadd.f32 %v1008_v48, %v896_v26  ;;  %v900_v36 = vadd.f32 %v899_v2, %v4235_v59  ;;  %2386 = vmatprep.subr.bf16.mxu0 %v3726_v47  ;;  %v4327_v17 = vpop.f32.mrb[21].mxu1 }
 0x126   : > { %v1084_v38 = vmul.f32 0.15, %v1007_v31  ;;  %v1011_v39 = vadd.f32 %v1010_v50, %v898_v32  ;;  %1631 = vmatmul.mubr.bf16.vlgmr.msra.gmra.mrb[32].mxu1 %v4274_v30  ;;  %v4331_v19 = vpop.f32.mrb[22].mxu1  ;;  %2387 = vmatpush1.bf16.msra.mxu0 %v3724_v63  ;;  %v3730_v32 = vld [vmem:[%s4975_s6 + $0x50] ss:$8 sps:$4 sm:$0xff]  }
 0x127   : > { %v1013_v42 = vadd.f32 %v1012_v51, %v900_v36  ;;  %1712 = vmatpush1.bf16.msra.mxu1 %v3667_v28  ;;  %v4340_v23 = vpop.f32.mrb[23].mxu1  ;;  %2388 = vmatprep.subr.bf16.mxu0 %v3729_v4  ;;  %v3735_v36 = vld [vmem:[%s4975_s6 + $0x64] ss:$8 sps:$4 sm:$0xff]  }
 0x128   : > { %v1086_v45 = vmul.f32 0.15, %v1011_v39  ;;  %1713 = vmatprep.subr.bf16.mxu1 %v3672_v33  ;;  %v1116_v51 = vmax.f32 %v1007_v31, %v1084_v38 }
 0x129   : > { %v903_v48 = vpop.f32.mrb[8].mxu0  ;;  %v4302_v50 = vpack.c.bf16 %v1013_v42, %v1009_v35  ;;  %v3679_v35 = vld [vmem:[%s4973_s4 + $0x88] ss:$16 sps:$4 sm:$0xff]  }
 0x12a   : > { %v1118_v53 = vmax.f32 %v1011_v39, %v1086_v45  ;;  %v904_v61 = vadd.f32 %v903_v48, %v4230_v57  ;;  %v905_v62 = vpop.f32.mrb[9].mxu0  ;;  %2389 = vmatpush1.bf16.msra.mxu0 %v3727_v21 }
 0x12b   : > { %v906_v0 = vadd.f32 %v905_v62, %v4235_v59  ;;  %1714 = vmatpush1.bf16.msra.mxu1 %v3670_v43  ;;  %v907_v1 = vpop.f32.mrb[10].mxu0  ;;  %1640 = vmatprep.mubr.bf16.mxu1 %v4302_v50  ;;  %v3684_v43 = vld [vmem:[%s4973_s4 + $0xac] ss:$16 sps:$4 sm:$0xff]  }
 0x12c   : > { %v1017_v5 = vadd.f32 %v4225_v55, %v904_v61  ;;  %v908_v7 = vadd.f32 %v907_v1, %v4230_v57  ;;  %v909_v8 = vpop.f32.mrb[11].mxu0  ;;  %1715 = vmatprep.subr.bf16.mxu1 %v3675_v46  ;;  %v4318_v10 = vpack.c.bf16 %v1118_v53, %v1116_v51  ;;  %v4369_v45 = vpop.f32.mrb[24].mxu1  ;;  %2390 = vmatprep.subr.bf16.mxu0 %v3732_v25  ;;  %v3733_v61 = vld [vmem:[%s4975_s6 + $0x60] ss:$8 sps:$4 sm:$0xff]   ;;  %v3738_v1 = vld [vmem:[%s4975_s6 + $0x74] ss:$8 sps:$4 sm:$0xff]  }
 0x12d   : > { %v1019_v14 = vadd.f32 %v4227_v56, %v906_v0  ;;  %v910_v16 = vadd.f32 %v909_v8, %v4235_v59  ;;  %v3676_v56 = vld [vmem:[%s4973_s4 + $0x68] ss:$16 sps:$4 sm:$0xff]   ;;  %v4373_v48 = vpop.f32.mrb[25].mxu1  ;;  %v3687_v0 = vld [vmem:[%s4973_s4 + $0xcc] ss:$16 sps:$4 sm:$0xff]  }
 0x12e   : > { %v1088_v55 = vmul.f32 0.15, %v1017_v5  ;;  %v1021_v18 = vadd.f32 %v4232_v58, %v908_v7  ;;  %1641 = vmatmul.mubr.bf16.gmra.mrb[36].mxu1 %v4318_v10  ;;  %v4377_v53 = vpop.f32.mrb[26].mxu1  ;;  %2391 = vmatpush1.bf16.msra.mxu0 %v3730_v32  ;;  %v3739_v32 = vld [vmem:[%s4975_s6 + $0x80] ss:$8 sps:$4 sm:$0xff]  }
 0x12f   : > { %v1023_v22 = vadd.f32 %v4237_v60, %v910_v16  ;;  %1716 = vmatpush1.bf16.msra.mxu1 %v3673_v3  ;;  %v4386_v63 = vpop.f32.mrb[27].mxu1  ;;  %2392 = vmatprep.subr.bf16.mxu0 %v3735_v36  ;;  %v3744_v36 = vld [vmem:[%s4975_s6 + $0x94] ss:$8 sps:$4 sm:$0xff]  }
 0x130   : > { %v1090_v58 = vmul.f32 0.15, %v1021_v18  ;;  %1717 = vmatprep.subr.bf16.mxu1 %v3678_v11  ;;  %v1120_v27 = vmax.f32 %v1017_v5, %v1088_v55  ;;  %v3736_v11 = vld [vmem:[%s4975_s6 + $0x70] ss:$8 sps:$4 sm:$0xff]  }
 0x131   : > { %v913_v26 = vpop.f32.mrb[12].mxu0  ;;  %v4348_v60 = vpack.c.bf16 %v1023_v22, %v1019_v14  ;;  %v3685_v55 = vld [vmem:[%s4973_s4 + $0xc8] ss:$16 sps:$4 sm:$0xff]  }
 0x132   : > { %v1122_v28 = vmax.f32 %v1021_v18, %v1090_v58  ;;  %v914_v29 = vadd.f32 %v913_v26, %v4230_v57  ;;  %v915_v31 = vpop.f32.mrb[13].mxu0  ;;  %2393 = vmatpush1.bf16.msra.mxu0 %v3733_v61  ;;  %v3741_v18 = vld [vmem:[%s4975_s6 + $0x84] ss:$8 sps:$4 sm:$0xff]   ;;  %v3691_v61 = vld [vmem:[%s4973_s4 + $0x108] ss:$16 sps:$4 sm:$0xff]  }
 0x133   : > { %v916_v2 = vadd.f32 %v915_v31, %v4235_v59  ;;  %1718 = vmatpush1.bf16.msra.mxu1 %v3676_v56  ;;  %v917_v33 = vpop.f32.mrb[14].mxu0  ;;  %1650 = vmatprep.mubr.bf16.mxu1 %v4348_v60 }
 0x134   : > { %v1027_v38 = vadd.f32 %v4242_v6, %v914_v29  ;;  %v918_v39 = vadd.f32 %v917_v33, %v4230_v57  ;;  %v919_v41 = vpop.f32.mrb[15].mxu0  ;;  %1719 = vmatprep.subr.bf16.mxu1 %v3681_v24  ;;  %v4364_v42 = vpack.c.bf16 %v1122_v28, %v1120_v27  ;;  %v3690_v24 = vld [vmem:[%s4973_s4 + $0xec] ss:$16 sps:$4 sm:$0xff]   ;;  %v4415_v25 = vpop.f32.mrb[28].mxu1  ;;  %2394 = vmatprep.subr.bf16.mxu0 %v3738_v1 }
 0x135   : > { %v1029_v46 = vadd.f32 %v4245_v9, %v916_v2  ;;  %v920_v47 = vadd.f32 %v919_v41, %v4235_v59  ;;  %v3682_v9 = vld [vmem:[%s4973_s4 + $0xa8] ss:$16 sps:$4 sm:$0xff]   ;;  %v4419_v28 = vpop.f32.mrb[29].mxu1 }
 0x136   : > { %v1092_v6 = vmul.f32 0.15, %v1027_v38  ;;  %v1031_v51 = vadd.f32 %v4247_v12, %v918_v39  ;;  %1651 = vmatmul.mubr.bf16.gmra.mrb[40].mxu1 %v4364_v42  ;;  %v4423_v31 = vpop.f32.mrb[30].mxu1  ;;  %2395 = vmatpush1.bf16.msra.mxu0 %v3736_v11 }
 0x137   : > { %v1033_v62 = vadd.f32 %v4252_v15, %v920_v47  ;;  %1720 = vmatpush1.bf16.msra.mxu1 %v3679_v35  ;;  %v4432_v33 = vpop.f32.mrb[31].mxu1  ;;  %2396 = vmatprep.subr.bf16.mxu0 %v3741_v18  ;;  %v3693_v35 = vld [vmem:[%s4973_s4 + $0x10c] ss:$16 sps:$4 sm:$0xff]   ;;  %v3742_v47 = vld [vmem:[%s4975_s6 + $0x90] ss:$8 sps:$4 sm:$0xff]  }
 0x138   : > { %v1094_v12 = vmul.f32 0.15, %v1031_v51  ;;  %1721 = vmatprep.subr.bf16.mxu1 %v3684_v43  ;;  %v1124_v4 = vmax.f32 %v1027_v38, %v1092_v6 }
 0x139   : > { %v923_v3 = vpop.f32.mrb[16].mxu0  ;;  %v4394_v15 = vpack.c.bf16 %v1033_v62, %v1029_v46  ;;  %v3747_v62 = vld [vmem:[%s4975_s6 + $0xa4] ss:$8 sps:$4 sm:$0xff]  }
 0x13a   : > { %v1126_v5 = vmax.f32 %v1031_v51, %v1094_v12  ;;  %v924_v7 = vadd.f32 %v923_v3, %v4230_v57  ;;  %v925_v8 = vpop.f32.mrb[17].mxu0  ;;  %2397 = vmatpush1.bf16.msra.mxu0 %v3739_v32  ;;  %v3696_v3 = vld [vmem:[%s4973_s4 + $0x12c] ss:$16 sps:$4 sm:$0xff]  }
 0x13b   : > { %v926_v14 = vadd.f32 %v925_v8, %v4235_v59  ;;  %1722 = vmatpush1.bf16.msra.mxu1 %v3682_v9  ;;  %v927_v16 = vpop.f32.mrb[18].mxu0  ;;  %1660 = vmatprep.mubr.bf16.mxu1 %v4394_v15 }
 0x13c   : > { %v1037_v21 = vadd.f32 %v4280_v34, %v924_v7  ;;  %v928_v22 = vadd.f32 %v927_v16, %v4230_v57  ;;  %v929_v56 = vpop.f32.mrb[19].mxu0  ;;  %1723 = vmatprep.subr.bf16.mxu1 %v3687_v0  ;;  %v4410_v58 = vpack.c.bf16 %v1126_v5, %v1124_v4  ;;  %2398 = vmatprep.subr.bf16.mxu0 %v3744_v36  ;;  %v3750_v16 = vld [vmem:[%s4975_s6 + $0xb4] ss:$8 sps:$4 sm:$0xff]  }
 0x13d   : > { %v1039_v26 = vadd.f32 %v4283_v37, %v926_v14  ;;  %v930_v27 = vadd.f32 %v929_v56, %v4235_v59  ;;  %v3688_v37 = vld [vmem:[%s4973_s4 + $0xe8] ss:$16 sps:$4 sm:$0xff]  }
 0x13e   : > { %v1096_v34 = vmul.f32 0.15, %v1037_v21  ;;  %v1041_v29 = vadd.f32 %v4286_v40, %v928_v22  ;;  %1661 = vmatmul.mubr.bf16.gmra.mrb[44].mxu1 %v4410_v58  ;;  %2399 = vmatpush1.bf16.msra.mxu0 %v3742_v47  ;;  %v3694_v14 = vld [vmem:[%s4973_s4 + $0x128] ss:$16 sps:$4 sm:$0xff]  }
 0x13f   : > { %v1043_v2 = vadd.f32 %v4294_v44, %v930_v27  ;;  %1724 = vmatpush1.bf16.msra.mxu1 %v3685_v55  ;;  %2400 = vmatprep.subr.bf16.mxu0 %v3747_v62 }
 0x140   : > { %v1098_v40 = vmul.f32 0.15, %v1041_v29  ;;  %1725 = vmatprep.subr.bf16.mxu1 %v3690_v24  ;;  %v1128_v39 = vmax.f32 %v1037_v21, %v1096_v34  ;;  %v3748_v24 = vld [vmem:[%s4975_s6 + $0xb0] ss:$8 sps:$4 sm:$0xff]  }
 0x141   : > { %v933_v38 = vpop.f32.mrb[20].mxu0  ;;  %v4440_v44 = vpack.c.bf16 %v1043_v2, %v1039_v26  ;;  %v3697_v34 = vld [vmem:[%s4973_s4 + $0x148] ss:$16 sps:$4 sm:$0xff]  }
 0x142   : > { %v1130_v41 = vmax.f32 %v1041_v29, %v1098_v40  ;;  %v934_v43 = vadd.f32 %v933_v38, %v4230_v57  ;;  %v935_v46 = vpop.f32.mrb[21].mxu0  ;;  %v3753_v29 = vld [vmem:[%s4975_s6 + $0xc4] ss:$8 sps:$4 sm:$0xff]  }
 0x143   : > { %v936_v6 = vadd.f32 %v935_v46, %v4235_v59  ;;  %1726 = vmatpush1.bf16.msra.mxu1 %v3688_v37  ;;  %v937_v51 = vpop.f32.mrb[22].mxu0  ;;  %1670 = vmatprep.mubr.bf16.mxu1 %v4440_v44  ;;  %v3700_v46 = vld [vmem:[%s4973_s4 + $0x168] ss:$16 sps:$4 sm:$0xff]  }
 0x144   : > { %v1047_v9 = vadd.f32 %v4323_v13, %v934_v43  ;;  %v938_v12 = vadd.f32 %v937_v51, %v4230_v57  ;;  %v939_v0 = vpop.f32.mrb[23].mxu0  ;;  %1727 = vmatprep.subr.bf16.mxu1 %v3693_v35  ;;  %v4456_v1 = vpack.c.bf16 %v1130_v41, %v1128_v39  ;;  %v3745_v13 = vld [vmem:[%s4975_s6 + $0xa0] ss:$8 sps:$4 sm:$0xff]   ;;  %v3702_v35 = vld [vmem:[%s4973_s4 + $0x16c] ss:$16 sps:$4 sm:$0xff]  }
 0x145   : > { %v1049_v4 = vadd.f32 %v4327_v17, %v936_v6  ;;  %v940_v5 = vadd.f32 %v939_v0, %v4235_v59  ;;  %2401 = vmatpush1.bf16.msra.mxu0 %v3745_v13  ;;  %v3703_v0 = vld [vmem:[%s4973_s4 + $0x188] ss:$16 sps:$4 sm:$0xff]  }
 0x146   : > { %v1100_v7 = vmul.f32 0.15, %v1047_v9  ;;  %v1051_v8 = vadd.f32 %v4331_v19, %v938_v12  ;;  %1671 = vmatmul.mubr.bf16.gmra.mrb[48].mxu1 %v4456_v1  ;;  %v3699_v19 = vld [vmem:[%s4973_s4 + $0x14c] ss:$16 sps:$4 sm:$0xff]   ;;  %2402 = vmatprep.subr.bf16.mxu0 %v3750_v16 }
 0x147   : > { %v1053_v11 = vadd.f32 %v4340_v23, %v940_v5  ;;  %1728 = vmatpush1.bf16.msra.mxu1 %v3691_v61  ;;  %v3711_v16 = vld [vmem:[%s4973_s4 + $0x1cc] ss:$16 sps:$4 sm:$0xff]  }
 0x148   : > { %v1102_v17 = vmul.f32 0.15, %v1051_v8  ;;  %1729 = vmatprep.subr.bf16.mxu1 %v3696_v3  ;;  %v1132_v23 = vmax.f32 %v1047_v9, %v1100_v7 }
 0x149   : > { %v943_v55 = vpop.f32.mrb[24].mxu0  ;;  %v4478_v18 = vpack.c.bf16 %v1053_v11, %v1049_v4  ;;  %2403 = vmatpush1.bf16.msra.mxu0 %v3748_v24 }
 0x14a   : > { %v1134_v21 = vmax.f32 %v1051_v8, %v1102_v17  ;;  %v944_v22 = vadd.f32 %v943_v55, %v4230_v57  ;;  %v945_v56 = vpop.f32.mrb[25].mxu0  ;;  %2404 = vmatprep.subr.bf16.mxu0 %v3753_v29  ;;  %v3708_v8 = vld [vmem:[%s4973_s4 + $0x1ac] ss:$16 sps:$4 sm:$0xff]  }
 0x14b   : > { %v946_v26 = vadd.f32 %v945_v56, %v4235_v59  ;;  %1730 = vmatpush1.bf16.msra.mxu1 %v3694_v14  ;;  %v947_v27 = vpop.f32.mrb[26].mxu0  ;;  %1680 = vmatprep.mubr.bf16.mxu1 %v4478_v18 }
 0x14c   : > { %v1057_v32 = vadd.f32 %v4369_v45, %v944_v22  ;;  %v948_v2 = vadd.f32 %v947_v27, %v4230_v57  ;;  %v949_v37 = vpop.f32.mrb[27].mxu0  ;;  %1731 = vmatprep.subr.bf16.mxu1 %v3699_v19  ;;  %v4494_v40 = vpack.c.bf16 %v1134_v21, %v1132_v23  ;;  %v3751_v45 = vld [vmem:[%s4975_s6 + $0xc0] ss:$8 sps:$4 sm:$0xff]   ;;  %v3714_v23 = vld [vmem:[%s4973_s4 + $0x1ec] ss:$16 sps:$4 sm:$0xff]  }
 0x14d   : > { %v1059_v36 = vadd.f32 %v4373_v48, %v946_v26  ;;  %v950_v38 = vadd.f32 %v949_v37, %v4235_v59  ;;  %2405 = vmatpush1.bf16.msra.mxu0 %v3751_v45  ;;  %v3712_v21 = vld [vmem:[%s4973_s4 + $0x1e8] ss:$16 sps:$4 sm:$0xff]  }
 0x14e   : > { %v1104_v39 = vmul.f32 0.15, %v1057_v32  ;;  %v1061_v41 = vadd.f32 %v4377_v53, %v948_v2  ;;  %1681 = vmatmul.mubr.bf16.gmra.mrb[52].mxu1 %v4494_v40  ;;  %v3705_v53 = vld [vmem:[%s4973_s4 + $0x18c] ss:$16 sps:$4 sm:$0xff]   ;;  %v3754_v22 = vld [vmem:[%s4975_s6 + $0xd0] ss:$8 sps:$4 sm:$0xff]  }
 0x14f   : > { %v1063_v43 = vadd.f32 %v4386_v63, %v950_v38  ;;  %1732 = vmatpush1.bf16.msra.mxu1 %v3697_v34 }
 0x150   : > { %v1106_v48 = vmul.f32 0.15, %v1061_v41  ;;  %1733 = vmatprep.subr.bf16.mxu1 %v3702_v35  ;;  %v1136_v51 = vmax.f32 %v1057_v32, %v1104_v39 }
 0x151   : > { %v953_v47 = vpop.f32.mrb[28].mxu0  ;;  %v4513_v6 = vpack.c.bf16 %v1063_v43, %v1059_v36  ;;  %v4604_v36 = vld [vmem:[%s4977_s8] sm:$0xff]  }
 0x152   : > { %v1138_v61 = vmax.f32 %v1061_v41, %v1106_v48  ;;  %v954_v62 = vadd.f32 %v953_v47, %v4230_v57  ;;  %v955_v63 = vpop.f32.mrb[29].mxu0  ;;  %v4610_v41 = vld [vmem:[%s4977_s8 + $0x48] sm:$0xff]  }
 0x153   : > { %v956_v9 = vadd.f32 %v955_v63, %v4235_v59  ;;  %1734 = vmatpush1.bf16.msra.mxu1 %v3700_v46  ;;  %v957_v12 = vpop.f32.mrb[30].mxu0  ;;  %1690 = vmatprep.mubr.bf16.mxu1 %v4513_v6  ;;  %v4622_v63 = vld [vmem:[%s4977_s8 + $0x8] sm:$0xff]  }
 0x154   : > { %v1067_v3 = vadd.f32 %v4415_v25, %v954_v62  ;;  %v958_v4 = vadd.f32 %v957_v12, %v4230_v57  ;;  %v959_v5 = vpop.f32.mrb[31].mxu0  ;;  %1735 = vmatprep.subr.bf16.mxu1 %v3705_v53  ;;  %v1188_v7 = vpack.c.bf16 %v1138_v61, %v1136_v51  ;;  %v3706_v57 = vld [vmem:[%s4973_s4 + $0x1a8] ss:$16 sps:$4 sm:$0xff]  }
 0x155   : > { %v1069_v13 = vadd.f32 %v4419_v28, %v956_v9  ;;  %v960_v11 = vadd.f32 %v959_v5, %v4235_v59  ;;  %v3763_v62 = vld [vmem:[%s4975_s6 + $0x100] ss:$8 sps:$4 sm:$0xff]  }
 0x156   : > { %v1108_v14 = vmul.f32 0.15, %v1067_v3  ;;  %v1071_v17 = vadd.f32 %v4423_v31, %v958_v4  ;;  %1691 = vmatmul.mubr.bf16.gmra.mrb[56].mxu1 %v1188_v7  ;;  %v3709_v31 = vld [vmem:[%s4973_s4 + $0x1c8] ss:$16 sps:$4 sm:$0xff]   ;;  %v4631_v4 = vld [vmem:[%s4977_s8 + $0x50] sm:$0xff]  }
 0x157   : > { %v1073_v19 = vadd.f32 %v4432_v33, %v960_v11  ;;  %1736 = vmatpush1.bf16.msra.mxu1 %v3703_v0  ;;  %v3766_v11 = vld [vmem:[%s4975_s6 + $0x110] ss:$8 sps:$4 sm:$0xff]  }
 0x158   : > { %v1110_v25 = vmul.f32 0.15, %v1071_v17  ;;  %1737 = vmatprep.subr.bf16.mxu1 %v3708_v8  ;;  %v1140_v55 = vmax.f32 %v1067_v3, %v1108_v14  ;;  %v3768_v3 = vld [vmem:[%s4975_s6 + $0x114] ss:$8 sps:$4 sm:$0xff]  }
 0x159   : > { %v1191_v28 = vpack.c.bf16 %v1073_v19, %v1069_v13  ;;  %v4642_v14 = vld [vmem:[%s4977_s8 + $0x10] sm:$0xff]  }
 0x15a   : > { %v1142_v59 = vmax.f32 %v1071_v17, %v1110_v25  ;;  %v4650_v25 = vld [vmem:[%s4977_s8 + $0x58] sm:$0xff]  }
 0x15b   : > { %1738 = vmatpush1.bf16.msra.mxu1 %v3706_v57  ;;  %1700 = vmatprep.mubr.bf16.mxu1 %v1191_v28  ;;  %v3771_v57 = vld [vmem:[%s4975_s6 + $0x124] ss:$8 sps:$4 sm:$0xff]  }
 0x15c   : > { %1739 = vmatprep.subr.bf16.mxu1 %v3711_v16  ;;  %v1190_v33 = vpack.c.bf16 %v1142_v59, %v1140_v55 }
 0x15e   : > { %1701 = vmatmul.mubr.bf16.gmra.mrb[60].mxu1 %v1190_v33 }
 0x15f   : > { %1740 = vmatpush1.bf16.msra.mxu1 %v3709_v31  ;;  %1743 = vmatprep.mubr.bf16.mxu1 %v4260_v20  ;;  %v3756_v20 = vld [vmem:[%s4975_s6 + $0xd4] ss:$8 sps:$4 sm:$0xff]  }
 0x160   : > { %1741 = vmatprep.subr.bf16.mxu1 %v3714_v23  ;;  %2406 = vmatprep.subr.bf16.mxu0 %v3756_v20 }
 0x161   : > { %2407 = vmatpush1.bf16.msra.mxu0 %v3754_v22  ;;  %v3769_v22 = vld [vmem:[%s4975_s6 + $0x120] ss:$8 sps:$4 sm:$0xff]  }
 0x163   : > { %1742 = vmatpush1.bf16.msra.mxu1 %v3712_v21 }
 0x166   : > { %1744 = vmatmul.mubr.bf16.vlgmr.msra.gmra.mrb[64].mxu1 %v4274_v30  ;;  %v3759_v30 = vld [vmem:[%s4975_s6 + $0xe4] ss:$8 sps:$4 sm:$0xff]  }
 0x167   : > { %1753 = vmatprep.mubr.bf16.mxu1 %v4302_v50  ;;  %v3757_v50 = vld [vmem:[%s4975_s6 + $0xe0] ss:$8 sps:$4 sm:$0xff]   ;;  %2408 = vmatprep.subr.bf16.mxu0 %v3759_v30  ;;  %v4662_v30 = vld [vmem:[%s4977_s8 + $0x18] sm:$0xff]  }
 0x168   : > { %2409 = vmatpush1.bf16.msra.mxu0 %v3757_v50 }
 0x16e   : > { %1754 = vmatmul.mubr.bf16.gmra.mrb[68].mxu1 %v4318_v10  ;;  %v3762_v10 = vld [vmem:[%s4975_s6 + $0xf4] ss:$8 sps:$4 sm:$0xff]  }
 0x16f   : > { %1763 = vmatprep.mubr.bf16.mxu1 %v4348_v60  ;;  %v3760_v60 = vld [vmem:[%s4975_s6 + $0xf0] ss:$8 sps:$4 sm:$0xff]   ;;  %2410 = vmatprep.subr.bf16.mxu0 %v3762_v10 }
 0x170   : > { %2411 = vmatpush1.bf16.msra.mxu0 %v3760_v60 }
 0x176   : > { %1764 = vmatmul.mubr.bf16.gmra.mrb[72].mxu1 %v4364_v42  ;;  %v3765_v42 = vld [vmem:[%s4975_s6 + $0x104] ss:$8 sps:$4 sm:$0xff]  }
 0x177   : > { %1773 = vmatprep.mubr.bf16.mxu1 %v4394_v15  ;;  %2493 = vmatprep.subr.bf16.mxu0 %v3765_v42  ;;  %v4582_v15 = vld [vmem:[%s4974_s5] sm:$0xf]  ;;  %v3774_v42 = vld [vmem:[%s4975_s6 + $0x134] ss:$8 sps:$4 sm:$0xff]  }
 0x17e   : > { %1774 = vmatmul.mubr.bf16.gmra.mrb[76].mxu1 %v4410_v58  ;;  %v4586_v58 = vrot.slane %v4582_v15, %v4217_v52 }
 0x17f   : > { %1783 = vmatprep.mubr.bf16.mxu1 %v4440_v44  ;;  %v4590_v44 = vrot.slane %v4582_v15, %v4223_v54 }
 0x186   : > { %1784 = vmatmul.mubr.bf16.gmra.mrb[80].mxu1 %v4456_v1 }
 0x187   : > { %1793 = vmatprep.mubr.bf16.mxu1 %v4478_v18 }
 0x18e   : > { %1794 = vmatmul.mubr.bf16.gmra.mrb[84].mxu1 %v4494_v40  ;;  %v4599_v40 = vld [vmem:[%s4977_s8 + $0x40] sm:$0xff]  }
 0x18f   : > { %1803 = vmatprep.mubr.bf16.mxu1 %v4513_v6  ;;  %3361 = vmatprep.subr.bf16.mxu1 %v4599_v40 }
 0x190   : > { %3369 = vmatpush3.bf16.msra.mxu1 %v4604_v36 }
 0x191   : > { %3362 = vmatprep.subr.bf16.mxu1 %v4610_v41 }
 0x194   : > { %3370 = vmatpush3.bf16.msra.mxu1 %v4622_v63 }
 0x195   : > { %3363 = vmatprep.subr.bf16.mxu1 %v4631_v4 }
 0x196   : > { %1804 = vmatmul.mubr.bf16.gmra.mrb[88].mxu1 %v1188_v7 }
 0x197   : > { %1813 = vmatprep.mubr.bf16.mxu1 %v1191_v28 }
 0x198   : > { %3371 = vmatpush3.bf16.msra.mxu1 %v4642_v14 }
 0x199   : > { %3364 = vmatprep.subr.bf16.mxu1 %v4650_v25 }
 0x19c   : > { %3372 = vmatpush3.bf16.msra.mxu1 %v4662_v30 }
 0x19e   : > { %1814 = vmatmul.mubr.bf16.gmra.mrb[92].mxu1 %v1190_v33 }
 0x1f9   : > { %v1632_v1 = vpop.f32.mrb[32].mxu1 }
 0x1fa   : > { %v1633_v18 = vadd.f32 %v1632_v1, %v4586_v58  ;;  %v1634_v56 = vpop.f32.mrb[33].mxu1  ;;  %v4671_v1 = vld [vmem:[%s4977_s8 + $0x60] sm:$0xff]  }
 0x1fb   : > { %v1635_v24 = vadd.f32 %v1634_v56, %v4590_v44  ;;  %v1636_v26 = vpop.f32.mrb[34].mxu1  ;;  %3365 = vmatprep.subr.bf16.mxu1 %v4671_v1 }
 0x1fc   : > { %v1824_v27 = vmul.f32 0.15, %v1633_v18  ;;  %v1637_v34 = vadd.f32 %v1636_v26, %v4586_v58  ;;  %v1638_v29 = vpop.f32.mrb[35].mxu1 }
 0x1fd   : > { %v1825_v32 = vmul.f32 0.15, %v1635_v24  ;;  %v1639_v2 = vadd.f32 %v1638_v29, %v4590_v44 }
 0x1fe   : > { %v1828_v37 = vmul.f32 0.15, %v1637_v34  ;;  %v1888_v38 = vmax.f32 %v1633_v18, %v1824_v27  ;;  %v3772_v27 = vld [vmem:[%s4975_s6 + $0x130] ss:$8 sps:$4 sm:$0xff]  }
 0x1ff   : > { %v1829_v35 = vmul.f32 0.15, %v1639_v2  ;;  %v1889_v45 = vmax.f32 %v1635_v24, %v1825_v32 }
 0x200   : > { %v1892_v39 = vmax.f32 %v1637_v34, %v1828_v37  ;;  %v4682_v34 = vld [vmem:[%s4977_s8 + $0x20] sm:$0xff]  }
 0x201   : > { %v1893_v43 = vmax.f32 %v1639_v2, %v1829_v35  ;;  %v1642_v46 = vpop.f32.mrb[36].mxu1  ;;  %v3777_v2 = vld [vmem:[%s4975_s6 + $0x144] ss:$8 sps:$4 sm:$0xff]   ;;  %3373 = vmatpush3.bf16.msra.mxu1 %v4682_v34 }
 0x202   : > { %v1952_v48 = vpack.c.bf16 %v1892_v39, %v1888_v38  ;;  %v1643_v53 = vadd.f32 %v1642_v46, %v4586_v58  ;;  %v1644_v47 = vpop.f32.mrb[37].mxu1 }
 0x203   : > { %v1645_v6 = vadd.f32 %v1644_v47, %v4590_v44  ;;  %v1646_v51 = vpop.f32.mrb[38].mxu1  ;;  %v1953_v61 = vpack.c.bf16 %v1893_v43, %v1889_v45  ;;  %v3775_v47 = vld [vmem:[%s4975_s6 + $0x140] ss:$8 sps:$4 sm:$0xff]  }
 0x204   : > { %v1832_v9 = vmul.f32 0.15, %v1643_v53  ;;  %v1647_v12 = vadd.f32 %v1646_v51, %v4586_v58  ;;  %v1648_v0 = vpop.f32.mrb[39].mxu1 }
 0x205   : > { %v1833_v5 = vmul.f32 0.15, %v1645_v6  ;;  %v1649_v7 = vadd.f32 %v1648_v0, %v4590_v44  ;;  %2412 = vmatprep.mubr.bf16.mxu0 %v1953_v61 }
 0x206   : > { %v1836_v8 = vmul.f32 0.15, %v1647_v12  ;;  %2413 = vmatmul.mubr.bf16.vlgmr.msra.gmra.mrb[32].mxu0 %v1952_v48  ;;  %v1896_v17 = vmax.f32 %v1643_v53, %v1832_v9 }
 0x207   : > { %v1837_v13 = vmul.f32 0.15, %v1649_v7  ;;  %2494 = vmatpush1.bf16.msra.mxu0 %v3763_v62  ;;  %v1897_v16 = vmax.f32 %v1645_v6, %v1833_v5  ;;  %v3780_v62 = vld [vmem:[%s4975_s6 + $0x154] ss:$8 sps:$4 sm:$0xff]   ;;  %v3778_v5 = vld [vmem:[%s4975_s6 + $0x150] ss:$8 sps:$4 sm:$0xff]  }
 0x208   : > { %v1900_v19 = vmax.f32 %v1647_v12, %v1836_v8  ;;  %2495 = vmatprep.subr.bf16.mxu0 %v3768_v3 }
 0x209   : > { %v1901_v28 = vmax.f32 %v1649_v7, %v1837_v13  ;;  %v1652_v55 = vpop.f32.mrb[40].mxu1  ;;  %v3783_v13 = vld [vmem:[%s4975_s6 + $0x164] ss:$8 sps:$4 sm:$0xff]  }
 0x20a   : > { %v1653_v59 = vadd.f32 %v1652_v55, %v4586_v58  ;;  %v1654_v31 = vpop.f32.mrb[41].mxu1  ;;  %v1956_v33 = vpack.c.bf16 %v1900_v19, %v1896_v17 }
 0x20b   : > { %v1655_v23 = vadd.f32 %v1654_v31, %v4590_v44  ;;  %2496 = vmatpush1.bf16.msra.mxu0 %v3766_v11  ;;  %v1656_v21 = vpop.f32.mrb[42].mxu1  ;;  %v1957_v20 = vpack.c.bf16 %v1901_v28, %v1897_v16 }
 0x20c   : > { %v1840_v50 = vmul.f32 0.15, %v1653_v59  ;;  %v1657_v10 = vadd.f32 %v1656_v21, %v4586_v58  ;;  %v1658_v60 = vpop.f32.mrb[43].mxu1  ;;  %2497 = vmatprep.subr.bf16.mxu0 %v3771_v57 }
 0x20d   : > { %v1841_v18 = vmul.f32 0.15, %v1655_v23  ;;  %v1659_v56 = vadd.f32 %v1658_v60, %v4590_v44  ;;  %2422 = vmatprep.mubr.bf16.mxu0 %v1957_v20 }
 0x20e   : > { %v1844_v24 = vmul.f32 0.15, %v1657_v10  ;;  %2423 = vmatmul.mubr.bf16.gmra.mrb[36].mxu0 %v1956_v33  ;;  %v1904_v29 = vmax.f32 %v1653_v59, %v1840_v50  ;;  %v3781_v33 = vld [vmem:[%s4975_s6 + $0x160] ss:$8 sps:$4 sm:$0xff]  }
 0x20f   : > { %v1845_v26 = vmul.f32 0.15, %v1659_v56  ;;  %2498 = vmatpush1.bf16.msra.mxu0 %v3769_v22  ;;  %v1905_v37 = vmax.f32 %v1655_v23, %v1841_v18  ;;  %v3786_v22 = vld [vmem:[%s4975_s6 + $0x174] ss:$8 sps:$4 sm:$0xff]   ;;  %v3784_v18 = vld [vmem:[%s4975_s6 + $0x170] ss:$8 sps:$4 sm:$0xff]  }
 0x210   : > { %v1908_v32 = vmax.f32 %v1657_v10, %v1844_v24  ;;  %2499 = vmatprep.subr.bf16.mxu0 %v3774_v42 }
 0x211   : > { %v1909_v35 = vmax.f32 %v1659_v56, %v1845_v26  ;;  %v1662_v38 = vpop.f32.mrb[44].mxu1  ;;  %v3789_v26 = vld [vmem:[%s4975_s6 + $0x184] ss:$8 sps:$4 sm:$0xff]  }
 0x212   : > { %v1663_v39 = vadd.f32 %v1662_v38, %v4586_v58  ;;  %v1664_v45 = vpop.f32.mrb[45].mxu1  ;;  %v1960_v43 = vpack.c.bf16 %v1908_v32, %v1904_v29 }
 0x213   : > { %v1665_v46 = vadd.f32 %v1664_v45, %v4590_v44  ;;  %2500 = vmatpush1.bf16.msra.mxu0 %v3772_v27  ;;  %v1666_v48 = vpop.f32.mrb[46].mxu1  ;;  %v1961_v53 = vpack.c.bf16 %v1909_v35, %v1905_v37 }
 0x214   : > { %v1848_v6 = vmul.f32 0.15, %v1663_v39  ;;  %v1667_v51 = vadd.f32 %v1666_v48, %v4586_v58  ;;  %v1668_v61 = vpop.f32.mrb[47].mxu1  ;;  %2501 = vmatprep.subr.bf16.mxu0 %v3777_v2 }
 0x215   : > { %v1849_v9 = vmul.f32 0.15, %v1665_v46  ;;  %v1669_v12 = vadd.f32 %v1668_v61, %v4590_v44  ;;  %2432 = vmatprep.mubr.bf16.mxu0 %v1961_v53 }
 0x216   : > { %v1852_v0 = vmul.f32 0.15, %v1667_v51  ;;  %2433 = vmatmul.mubr.bf16.gmra.mrb[40].mxu0 %v1960_v43  ;;  %v1912_v7 = vmax.f32 %v1663_v39, %v1848_v6  ;;  %v3787_v43 = vld [vmem:[%s4975_s6 + $0x180] ss:$8 sps:$4 sm:$0xff]  }
 0x217   : > { %v1853_v3 = vmul.f32 0.15, %v1669_v12  ;;  %2502 = vmatpush1.bf16.msra.mxu0 %v3775_v47  ;;  %v1913_v11 = vmax.f32 %v1665_v46, %v1849_v9  ;;  %v3792_v47 = vld [vmem:[%s4975_s6 + $0x194] ss:$8 sps:$4 sm:$0xff]   ;;  %v3790_v9 = vld [vmem:[%s4975_s6 + $0x190] ss:$8 sps:$4 sm:$0xff]  }
 0x218   : > { %v1916_v8 = vmax.f32 %v1667_v51, %v1852_v0  ;;  %2503 = vmatprep.subr.bf16.mxu0 %v3780_v62 }
 0x219   : > { %v1917_v17 = vmax.f32 %v1669_v12, %v1853_v3  ;;  %v1672_v19 = vpop.f32.mrb[48].mxu1  ;;  %v3795_v3 = vld [vmem:[%s4975_s6 + $0x1a4] ss:$8 sps:$4 sm:$0xff]  }
 0x21a   : > { %v1673_v57 = vadd.f32 %v1672_v19, %v4586_v58  ;;  %v1674_v16 = vpop.f32.mrb[49].mxu1  ;;  %v1964_v28 = vpack.c.bf16 %v1916_v8, %v1912_v7 }
 0x21b   : > { %v1675_v55 = vadd.f32 %v1674_v16, %v4590_v44  ;;  %2504 = vmatpush1.bf16.msra.mxu0 %v3778_v5  ;;  %v1676_v59 = vpop.f32.mrb[50].mxu1  ;;  %v1965_v31 = vpack.c.bf16 %v1917_v17, %v1913_v11 }
 0x21c   : > { %v1856_v23 = vmul.f32 0.15, %v1673_v57  ;;  %v1677_v21 = vadd.f32 %v1676_v59, %v4586_v58  ;;  %v1678_v20 = vpop.f32.mrb[51].mxu1  ;;  %2505 = vmatprep.subr.bf16.mxu0 %v3783_v13 }
 0x21d   : > { %v1857_v50 = vmul.f32 0.15, %v1675_v55  ;;  %v1679_v10 = vadd.f32 %v1678_v20, %v4590_v44  ;;  %2442 = vmatprep.mubr.bf16.mxu0 %v1965_v31 }
 0x21e   : > { %v1860_v60 = vmul.f32 0.15, %v1677_v21  ;;  %2443 = vmatmul.mubr.bf16.gmra.mrb[44].mxu0 %v1964_v28  ;;  %v1920_v56 = vmax.f32 %v1673_v57, %v1856_v23  ;;  %v3793_v28 = vld [vmem:[%s4975_s6 + $0x1a0] ss:$8 sps:$4 sm:$0xff]  }
 0x21f   : > { %v1861_v42 = vmul.f32 0.15, %v1679_v10  ;;  %2506 = vmatpush1.bf16.msra.mxu0 %v3781_v33  ;;  %v1921_v27 = vmax.f32 %v1675_v55, %v1857_v50  ;;  %v3798_v33 = vld [vmem:[%s4975_s6 + $0x1b4] ss:$8 sps:$4 sm:$0xff]   ;;  %v3796_v50 = vld [vmem:[%s4975_s6 + $0x1b0] ss:$8 sps:$4 sm:$0xff]  }
 0x220   : > { %v1924_v24 = vmax.f32 %v1677_v21, %v1860_v60  ;;  %2507 = vmatprep.subr.bf16.mxu0 %v3786_v22 }
 0x221   : > { %v1925_v29 = vmax.f32 %v1679_v10, %v1861_v42  ;;  %v1682_v32 = vpop.f32.mrb[52].mxu1  ;;  %v3801_v42 = vld [vmem:[%s4975_s6 + $0x1c4] ss:$8 sps:$4 sm:$0xff]  }
 0x222   : > { %v1683_v2 = vadd.f32 %v1682_v32, %v4586_v58  ;;  %v1684_v37 = vpop.f32.mrb[53].mxu1  ;;  %v1968_v35 = vpack.c.bf16 %v1924_v24, %v1920_v56  ;;  %v1268_v32 = vsub.s32 2, %v4214_v49 }
 0x223   : > { %v1685_v38 = vadd.f32 %v1684_v37, %v4590_v44  ;;  %2508 = vmatpush1.bf16.msra.mxu0 %v3784_v18  ;;  %v1686_v39 = vpop.f32.mrb[54].mxu1  ;;  %v1969_v45 = vpack.c.bf16 %v1925_v29, %v1921_v27 }
 0x224   : > { %v1864_v46 = vmul.f32 0.15, %v1683_v2  ;;  %v1687_v48 = vadd.f32 %v1686_v39, %v4586_v58  ;;  %v1688_v53 = vpop.f32.mrb[55].mxu1  ;;  %2509 = vmatprep.subr.bf16.mxu0 %v3789_v26  ;;  %v1272_v39 = vsub.s32 3, %v4214_v49  ;;  %v3802_v49 = vld [vmem:[%s4975_s6 + $0x1d0] ss:$8 sps:$4 sm:$0xff]  }
 0x225   : > { %v1865_v6 = vmul.f32 0.15, %v1685_v38  ;;  %v1689_v51 = vadd.f32 %v1688_v53, %v4590_v44  ;;  %2452 = vmatprep.mubr.bf16.mxu0 %v1969_v45 }
 0x226   : > { %v1868_v61 = vmul.f32 0.15, %v1687_v48  ;;  %2453 = vmatmul.mubr.bf16.gmra.mrb[48].mxu0 %v1968_v35  ;;  %v1928_v12 = vmax.f32 %v1683_v2, %v1864_v46 }
 0x227   : > { %v1869_v62 = vmul.f32 0.15, %v1689_v51  ;;  %2510 = vmatpush1.bf16.msra.mxu0 %v3787_v43  ;;  %v1929_v5 = vmax.f32 %v1685_v38, %v1865_v6  ;;  %v3799_v38 = vld [vmem:[%s4975_s6 + $0x1c0] ss:$8 sps:$4 sm:$0xff]  }
 0x228   : > { %v1932_v0 = vmax.f32 %v1687_v48, %v1868_v61  ;;  %2511 = vmatprep.subr.bf16.mxu0 %v3792_v47  ;;  %v3804_v48 = vld [vmem:[%s4975_s6 + $0x1d4] ss:$8 sps:$4 sm:$0xff]  }
 0x229   : > { %v1933_v7 = vmax.f32 %v1689_v51, %v1869_v62  ;;  %v1692_v8 = vpop.f32.mrb[56].mxu1  ;;  %v4765_v51 = vrot.slane %v4582_v15, %v1268_v32 }
 0x22a   : > { %v1693_v13 = vadd.f32 %v1692_v8, %v4586_v58  ;;  %v1694_v11 = vpop.f32.mrb[57].mxu1  ;;  %v1972_v17 = vpack.c.bf16 %v1932_v0, %v1928_v12 }
 0x22b   : > { %v1695_v19 = vadd.f32 %v1694_v11, %v4590_v44  ;;  %2512 = vmatpush1.bf16.msra.mxu0 %v3790_v9  ;;  %v1696_v57 = vpop.f32.mrb[58].mxu1  ;;  %v1973_v16 = vpack.c.bf16 %v1933_v7, %v1929_v5 }
 0x22c   : > { %v1872_v55 = vmul.f32 0.15, %v1693_v13  ;;  %v1697_v59 = vadd.f32 %v1696_v57, %v4586_v58  ;;  %v1698_v31 = vpop.f32.mrb[59].mxu1  ;;  %2513 = vmatprep.subr.bf16.mxu0 %v3795_v3 }
 0x22d   : > { %v1873_v23 = vmul.f32 0.15, %v1695_v19  ;;  %v1699_v21 = vadd.f32 %v1698_v31, %v4590_v44  ;;  %2462 = vmatprep.mubr.bf16.mxu0 %v1973_v16 }
 0x22e   : > { %v1876_v20 = vmul.f32 0.15, %v1697_v59  ;;  %2463 = vmatmul.mubr.bf16.gmra.mrb[52].mxu0 %v1972_v17  ;;  %v1936_v10 = vmax.f32 %v1693_v13, %v1872_v55  ;;  %v3805_v17 = vld [vmem:[%s4975_s6 + $0x1e0] ss:$8 sps:$4 sm:$0xff]  }
 0x22f   : > { %v1877_v22 = vmul.f32 0.15, %v1699_v21  ;;  %2514 = vmatpush1.bf16.msra.mxu0 %v3793_v28  ;;  %v1937_v18 = vmax.f32 %v1695_v19, %v1873_v23  ;;  %v3810_v28 = vld [vmem:[%s4975_s6 + $0x1f4] ss:$8 sps:$4 sm:$0xff]   ;;  %v3808_v23 = vld [vmem:[%s4975_s6 + $0x1f0] ss:$8 sps:$4 sm:$0xff]  }
 0x230   : > { %v1940_v60 = vmax.f32 %v1697_v59, %v1876_v20  ;;  %2515 = vmatprep.subr.bf16.mxu0 %v3798_v33 }
 0x231   : > { %v1941_v56 = vmax.f32 %v1699_v21, %v1877_v22  ;;  %v1702_v24 = vpop.f32.mrb[60].mxu1 }
 0x232   : > { %v1703_v26 = vadd.f32 %v1702_v24, %v4586_v58  ;;  %v1704_v27 = vpop.f32.mrb[61].mxu1  ;;  %v1976_v29 = vpack.c.bf16 %v1940_v60, %v1936_v10 }
 0x233   : > { %v1705_v2 = vadd.f32 %v1704_v27, %v4590_v44  ;;  %2516 = vmatpush1.bf16.msra.mxu0 %v3796_v50  ;;  %v1706_v37 = vpop.f32.mrb[62].mxu1  ;;  %v1977_v35 = vpack.c.bf16 %v1941_v56, %v1937_v18 }
 0x234   : > { %v1880_v45 = vmul.f32 0.15, %v1703_v26  ;;  %v1707_v43 = vadd.f32 %v1706_v37, %v4586_v58  ;;  %v1708_v46 = vpop.f32.mrb[63].mxu1  ;;  %2517 = vmatprep.subr.bf16.mxu0 %v3801_v42  ;;  %v4771_v58 = vrot.slane %v4582_v15, %v1272_v39 }
 0x235   : > { %v1881_v53 = vmul.f32 0.15, %v1705_v2  ;;  %v1709_v47 = vadd.f32 %v1708_v46, %v4590_v44  ;;  %2472 = vmatprep.mubr.bf16.mxu0 %v1977_v35  ;;  %v3807_v44 = vld [vmem:[%s4975_s6 + $0x1e4] ss:$8 sps:$4 sm:$0xff]  }
 0x236   : > { %v1884_v6 = vmul.f32 0.15, %v1707_v43  ;;  %2473 = vmatmul.mubr.bf16.gmra.mrb[56].mxu0 %v1976_v29  ;;  %v1944_v62 = vmax.f32 %v1703_v26, %v1880_v45 }
 0x237   : > { %v1885_v61 = vmul.f32 0.15, %v1709_v47  ;;  %2518 = vmatpush1.bf16.msra.mxu0 %v3799_v38  ;;  %v1945_v12 = vmax.f32 %v1705_v2, %v1881_v53 }
 0x238   : > { %v1948_v9 = vmax.f32 %v1707_v43, %v1884_v6  ;;  %2519 = vmatprep.subr.bf16.mxu0 %v3804_v48 }
 0x239   : > { %v1949_v0 = vmax.f32 %v1709_v47, %v1885_v61  ;;  %v1745_v3 = vpop.f32.mrb[64].mxu1 }
 0x23a   : > { %v1746_v5 = vadd.f32 %v1745_v3, %v4765_v51  ;;  %v1747_v7 = vpop.f32.mrb[65].mxu1  ;;  %v1980_v8 = vpack.c.bf16 %v1948_v9, %v1944_v62 }
 0x23b   : > { %v1748_v13 = vadd.f32 %v1747_v7, %v4771_v58  ;;  %2520 = vmatpush1.bf16.msra.mxu0 %v3802_v49  ;;  %v1749_v11 = vpop.f32.mrb[66].mxu1  ;;  %v1981_v15 = vpack.c.bf16 %v1949_v0, %v1945_v12 }
 0x23c   : > { %v1826_v19 = vmul.f32 0.15, %v1746_v5  ;;  %v1750_v57 = vadd.f32 %v1749_v11, %v4765_v51  ;;  %v1751_v16 = vpop.f32.mrb[67].mxu1  ;;  %2521 = vmatprep.subr.bf16.mxu0 %v3807_v44 }
 0x23d   : > { %v1827_v55 = vmul.f32 0.15, %v1748_v13  ;;  %v1752_v59 = vadd.f32 %v1751_v16, %v4771_v58  ;;  %2482 = vmatprep.mubr.bf16.mxu0 %v1981_v15 }
 0x23e   : > { %v1830_v31 = vmul.f32 0.15, %v1750_v57  ;;  %2483 = vmatmul.mubr.bf16.gmra.mrb[60].mxu0 %v1980_v8  ;;  %v1890_v21 = vmax.f32 %v1746_v5, %v1826_v19 }
 0x23f   : > { %v1831_v33 = vmul.f32 0.15, %v1752_v59  ;;  %2522 = vmatpush1.bf16.msra.mxu0 %v3805_v17  ;;  %v1891_v22 = vmax.f32 %v1748_v13, %v1827_v55 }
 0x240   : > { %v1894_v20 = vmax.f32 %v1750_v57, %v1830_v31  ;;  %2523 = vmatprep.subr.bf16.mxu0 %v3810_v28 }
 0x241   : > { %v1895_v50 = vmax.f32 %v1752_v59, %v1831_v33  ;;  %v1755_v10 = vpop.f32.mrb[68].mxu1 }
 0x242   : > { %v1954_v60 = vpack.c.bf16 %v1894_v20, %v1890_v21  ;;  %v1756_v42 = vadd.f32 %v1755_v10, %v4765_v51  ;;  %v1757_v18 = vpop.f32.mrb[69].mxu1 }
 0x243   : > { %v1758_v56 = vadd.f32 %v1757_v18, %v4771_v58  ;;  %2524 = vmatpush1.bf16.msra.mxu0 %v3808_v23  ;;  %v1759_v24 = vpop.f32.mrb[70].mxu1  ;;  %v1955_v26 = vpack.c.bf16 %v1895_v50, %v1891_v22 }
 0x244   : > { %v1834_v27 = vmul.f32 0.15, %v1756_v42  ;;  %v1760_v29 = vadd.f32 %v1759_v24, %v4765_v51  ;;  %v1761_v32 = vpop.f32.mrb[71].mxu1  ;;  %3297 = vmatprep.subr.bf16.mxu0 %v4599_v40 }
 0x245   : > { %v1835_v2 = vmul.f32 0.15, %v1758_v56  ;;  %v1762_v37 = vadd.f32 %v1761_v32, %v4771_v58  ;;  %2525 = vmatprep.mubr.bf16.mxu0 %v1955_v26 }
 0x246   : > { %v1838_v35 = vmul.f32 0.15, %v1760_v29  ;;  %2526 = vmatmul.mubr.bf16.vlgmr.msra.gmra.mrb[32].mxu0 %v1954_v60  ;;  %v1898_v39 = vmax.f32 %v1756_v42, %v1834_v27 }
 0x247   : > { %v1839_v38 = vmul.f32 0.15, %v1762_v37  ;;  %3298 = vmatpush3.bf16.msra.mxu0 %v4604_v36  ;;  %v1899_v43 = vmax.f32 %v1758_v56, %v1835_v2 }
 0x248   : > { %v1902_v45 = vmax.f32 %v1760_v29, %v1838_v35  ;;  %3299 = vmatprep.subr.bf16.mxu0 %v4610_v41 }
 0x249   : > { %v1903_v46 = vmax.f32 %v1762_v37, %v1839_v38  ;;  %v1765_v48 = vpop.f32.mrb[72].mxu1 }
 0x24a   : > { %v1766_v53 = vadd.f32 %v1765_v48, %v4765_v51  ;;  %v1767_v47 = vpop.f32.mrb[73].mxu1  ;;  %v1958_v40 = vpack.c.bf16 %v1902_v45, %v1898_v39 }
 0x24b   : > { %v1768_v6 = vadd.f32 %v1767_v47, %v4771_v58  ;;  %v1769_v61 = vpop.f32.mrb[74].mxu1  ;;  %v1959_v49 = vpack.c.bf16 %v1903_v46, %v1899_v43  ;;  %3300 = vmatpush3.bf16.msra.mxu0 %v4622_v63 }
 0x24c   : > { %v1842_v62 = vmul.f32 0.15, %v1766_v53  ;;  %v1770_v36 = vadd.f32 %v1769_v61, %v4765_v51  ;;  %v1771_v9 = vpop.f32.mrb[75].mxu1  ;;  %3301 = vmatprep.subr.bf16.mxu0 %v4631_v4 }
 0x24d   : > { %v1843_v41 = vmul.f32 0.15, %v1768_v6  ;;  %v1772_v44 = vadd.f32 %v1771_v9, %v4771_v58  ;;  %2535 = vmatprep.mubr.bf16.mxu0 %v1959_v49 }
 0x24e   : > { %v1846_v12 = vmul.f32 0.15, %v1770_v36  ;;  %2536 = vmatmul.mubr.bf16.gmra.mrb[36].mxu0 %v1958_v40  ;;  %v1906_v3 = vmax.f32 %v1766_v53, %v1842_v62 }
 0x24f   : > { %v1847_v0 = vmul.f32 0.15, %v1772_v44  ;;  %3302 = vmatpush3.bf16.msra.mxu0 %v4642_v14  ;;  %v1907_v63 = vmax.f32 %v1768_v6, %v1843_v41 }
 0x250   : > { %v1910_v5 = vmax.f32 %v1770_v36, %v1846_v12  ;;  %3303 = vmatprep.subr.bf16.mxu0 %v4650_v25 }
 0x251   : > { %v1911_v7 = vmax.f32 %v1772_v44, %v1847_v0  ;;  %v1775_v8 = vpop.f32.mrb[76].mxu1 }
 0x252   : > { %v1776_v13 = vadd.f32 %v1775_v8, %v4765_v51  ;;  %v1777_v11 = vpop.f32.mrb[77].mxu1  ;;  %v1962_v4 = vpack.c.bf16 %v1910_v5, %v1906_v3 }
 0x253   : > { %v1778_v15 = vadd.f32 %v1777_v11, %v4771_v58  ;;  %v1779_v17 = vpop.f32.mrb[78].mxu1  ;;  %v1963_v19 = vpack.c.bf16 %v1911_v7, %v1907_v63  ;;  %3304 = vmatpush3.bf16.msra.mxu0 %v4662_v30 }
 0x254   : > { %v1850_v57 = vmul.f32 0.15, %v1776_v13  ;;  %v1780_v14 = vadd.f32 %v1779_v17, %v4765_v51  ;;  %v1781_v16 = vpop.f32.mrb[79].mxu1  ;;  %3305 = vmatprep.subr.bf16.mxu0 %v4671_v1 }
 0x255   : > { %v1851_v25 = vmul.f32 0.15, %v1778_v15  ;;  %v1782_v28 = vadd.f32 %v1781_v16, %v4771_v58  ;;  %2545 = vmatprep.mubr.bf16.mxu0 %v1963_v19 }
 0x256   : > { %v1854_v55 = vmul.f32 0.15, %v1780_v14  ;;  %2546 = vmatmul.mubr.bf16.gmra.mrb[40].mxu0 %v1962_v4  ;;  %v1914_v31 = vmax.f32 %v1776_v13, %v1850_v57 }
 0x257   : > { %v1855_v59 = vmul.f32 0.15, %v1782_v28  ;;  %3306 = vmatpush3.bf16.msra.mxu0 %v4682_v34  ;;  %v1915_v23 = vmax.f32 %v1778_v15, %v1851_v25 }
 0x258   : > { %v1918_v33 = vmax.f32 %v1780_v14, %v1854_v55 }
 0x259   : > { %v1919_v21 = vmax.f32 %v1782_v28, %v1855_v59  ;;  %v1785_v30 = vpop.f32.mrb[80].mxu1 }
 0x25a   : > { %v1786_v20 = vadd.f32 %v1785_v30, %v4765_v51  ;;  %v1787_v22 = vpop.f32.mrb[81].mxu1  ;;  %v1966_v50 = vpack.c.bf16 %v1918_v33, %v1914_v31 }
 0x25b   : > { %v1788_v1 = vadd.f32 %v1787_v22, %v4771_v58  ;;  %v1789_v10 = vpop.f32.mrb[82].mxu1  ;;  %v1967_v60 = vpack.c.bf16 %v1919_v21, %v1915_v23 }
 0x25c   : > { %v1858_v42 = vmul.f32 0.15, %v1786_v20  ;;  %v1790_v18 = vadd.f32 %v1789_v10, %v4765_v51  ;;  %v1791_v56 = vpop.f32.mrb[83].mxu1 }
 0x25d   : > { %v1859_v24 = vmul.f32 0.15, %v1788_v1  ;;  %v1792_v34 = vadd.f32 %v1791_v56, %v4771_v58  ;;  %2555 = vmatprep.mubr.bf16.mxu0 %v1967_v60 }
 0x25e   : > { %v1862_v26 = vmul.f32 0.15, %v1790_v18  ;;  %2556 = vmatmul.mubr.bf16.gmra.mrb[44].mxu0 %v1966_v50  ;;  %v1922_v29 = vmax.f32 %v1786_v20, %v1858_v42 }
 0x25f   : > { %v1863_v27 = vmul.f32 0.15, %v1792_v34  ;;  %v1923_v2 = vmax.f32 %v1788_v1, %v1859_v24 }
 0x260   : > { %v1926_v32 = vmax.f32 %v1790_v18, %v1862_v26 }
 0x261   : > { %v1927_v37 = vmax.f32 %v1792_v34, %v1863_v27  ;;  %v1795_v35 = vpop.f32.mrb[84].mxu1 }
 0x262   : > { %v1796_v38 = vadd.f32 %v1795_v35, %v4765_v51  ;;  %v1797_v39 = vpop.f32.mrb[85].mxu1  ;;  %v1970_v45 = vpack.c.bf16 %v1926_v32, %v1922_v29  ;;  %v3823_v29 = vld [vmem:[%s4977_s8 + $0x70] sm:$0xff]   ;;  %v2048_v35 = vld [vmem:[%s4976_s7] sm:$0x3] }
 0x263   : > { %v1798_v43 = vadd.f32 %v1797_v39, %v4771_v58  ;;  %v1799_v46 = vpop.f32.mrb[86].mxu1  ;;  %v1971_v48 = vpack.c.bf16 %v1927_v37, %v1923_v2  ;;  %v3824_v32 = vld [vmem:[%s4977_s8 + $0x30] sm:$0xff]   ;;  %v3825_v2 = vld [vmem:[%s4977_s8 + $0x78] sm:$0xff]   ;;  %v4852_v39 = vrot.slane %v2048_v35, %v4223_v54 }
 0x264   : > { %v1866_v53 = vmul.f32 0.15, %v1796_v38  ;;  %v1800_v47 = vadd.f32 %v1799_v46, %v4765_v51  ;;  %v1801_v40 = vpop.f32.mrb[87].mxu1  ;;  %v3826_v37 = vld [vmem:[%s4977_s8 + $0x38] sm:$0xff]  }
 0x265   : > { %v1867_v6 = vmul.f32 0.15, %v1798_v43  ;;  %v1802_v61 = vadd.f32 %v1801_v40, %v4771_v58  ;;  %2565 = vmatprep.mubr.bf16.mxu0 %v1971_v48 }
 0x266   : > { %v1870_v49 = vmul.f32 0.15, %v1800_v47  ;;  %2566 = vmatmul.mubr.bf16.gmra.mrb[48].mxu0 %v1970_v45  ;;  %v1930_v36 = vmax.f32 %v1796_v38, %v1866_v53  ;;  %v4849_v38 = vrot.slane %v2048_v35, %v4217_v52 }
 0x267   : > { %v1871_v62 = vmul.f32 0.15, %v1802_v61  ;;  %v1931_v41 = vmax.f32 %v1798_v43, %v1867_v6 }
 0x268   : > { %v1934_v9 = vmax.f32 %v1800_v47, %v1870_v49 }
 0x269   : > { %v1935_v44 = vmax.f32 %v1802_v61, %v1871_v62  ;;  %v1805_v12 = vpop.f32.mrb[88].mxu1 }
 0x26a   : > { %v1806_v0 = vadd.f32 %v1805_v12, %v4765_v51  ;;  %v1807_v3 = vpop.f32.mrb[89].mxu1  ;;  %v1974_v5 = vpack.c.bf16 %v1934_v9, %v1930_v36 }
 0x26b   : > { %v1808_v63 = vadd.f32 %v1807_v3, %v4771_v58  ;;  %v1809_v7 = vpop.f32.mrb[90].mxu1  ;;  %v1975_v8 = vpack.c.bf16 %v1935_v44, %v1931_v41 }
 0x26c   : > { %v1874_v13 = vmul.f32 0.15, %v1806_v0  ;;  %v1810_v11 = vadd.f32 %v1809_v7, %v4765_v51  ;;  %v1811_v4 = vpop.f32.mrb[91].mxu1 }
 0x26d   : > { %v1875_v15 = vmul.f32 0.15, %v1808_v63  ;;  %v1812_v17 = vadd.f32 %v1811_v4, %v4771_v58  ;;  %2575 = vmatprep.mubr.bf16.mxu0 %v1975_v8 }
 0x26e   : > { %v1878_v19 = vmul.f32 0.15, %v1810_v11  ;;  %2576 = vmatmul.mubr.bf16.gmra.mrb[52].mxu0 %v1974_v5  ;;  %v1938_v14 = vmax.f32 %v1806_v0, %v1874_v13 }
 0x26f   : > { %v1879_v57 = vmul.f32 0.15, %v1812_v17  ;;  %v1939_v25 = vmax.f32 %v1808_v63, %v1875_v15 }
 0x270   : > { %v1942_v16 = vmax.f32 %v1810_v11, %v1878_v19 }
 0x271   : > { %v1943_v28 = vmax.f32 %v1812_v17, %v1879_v57  ;;  %v1815_v55 = vpop.f32.mrb[92].mxu1 }
 0x272   : > { %v1816_v59 = vadd.f32 %v1815_v55, %v4765_v51  ;;  %v1817_v31 = vpop.f32.mrb[93].mxu1  ;;  %v1978_v33 = vpack.c.bf16 %v1942_v16, %v1938_v14 }
 0x273   : > { %v1818_v23 = vadd.f32 %v1817_v31, %v4771_v58  ;;  %v1819_v21 = vpop.f32.mrb[94].mxu1  ;;  %v1979_v30 = vpack.c.bf16 %v1943_v28, %v1939_v25 }
 0x274   : > { %v1882_v20 = vmul.f32 0.15, %v1816_v59  ;;  %v1820_v22 = vadd.f32 %v1819_v21, %v4765_v51  ;;  %v1821_v50 = vpop.f32.mrb[95].mxu1  ;;  %v3821_v51 = vld [vmem:[%s4977_s8 + $0x68] sm:$0xff]  }
 0x275   : > { %v1883_v1 = vmul.f32 0.15, %v1818_v23  ;;  %v1822_v10 = vadd.f32 %v1821_v50, %v4771_v58  ;;  %2585 = vmatprep.mubr.bf16.mxu0 %v1979_v30  ;;  %v3822_v58 = vld [vmem:[%s4977_s8 + $0x28] sm:$0xff]   ;;  %3307 = vmatprep.subr.bf16.mxu0 %v3821_v51 }
 0x276   : > { %v1886_v60 = vmul.f32 0.15, %v1820_v22  ;;  %2586 = vmatmul.mubr.bf16.gmra.mrb[56].mxu0 %v1978_v33  ;;  %v1946_v18 = vmax.f32 %v1816_v59, %v1882_v20  ;;  %3366 = vmatprep.subr.bf16.mxu1 %v3821_v51 }
 0x277   : > { %v1887_v42 = vmul.f32 0.15, %v1822_v10  ;;  %v1947_v24 = vmax.f32 %v1818_v23, %v1883_v1  ;;  %3308 = vmatpush3.bf16.msra.mxu0 %v3822_v58  ;;  %3374 = vmatpush3.bf16.msra.mxu1 %v3822_v58 }
 0x278   : > { %v1950_v56 = vmax.f32 %v1820_v22, %v1886_v60  ;;  %3309 = vmatprep.subr.bf16.mxu0 %v3823_v29  ;;  %3367 = vmatprep.subr.bf16.mxu1 %v3823_v29 }
 0x279   : > { %v1951_v34 = vmax.f32 %v1822_v10, %v1887_v42 }
 0x27a   : > { %v1982_v26 = vpack.c.bf16 %v1950_v56, %v1946_v18 }
 0x27b   : > { %v1983_v27 = vpack.c.bf16 %v1951_v34, %v1947_v24  ;;  %3310 = vmatpush3.bf16.msra.mxu0 %v3824_v32  ;;  %3375 = vmatpush3.bf16.msra.mxu1 %v3824_v32 }
 0x27c   : > { %3311 = vmatprep.subr.bf16.mxu0 %v3825_v2  ;;  %3368 = vmatprep.subr.bf16.mxu1 %v3825_v2 }
 0x27d   : > { %2595 = vmatprep.mubr.bf16.mxu0 %v1983_v27 }
 0x27e   : > { %2596 = vmatmul.mubr.bf16.gmra.mrb[60].mxu0 %v1982_v26 }
 0x27f   : > { %3312 = vmatpush3.bf16.msra.mxu0 %v3826_v37  ;;  %3376 = vmatpush3.bf16.msra.mxu1 %v3826_v37 }
 0x319   : > { %v2527_v45 = vpop.f32.mrb[32].mxu0 }
 0x31a   : > { %v3441_v43 = vadd.f32 %v2527_v45, %v4849_v38  ;;  %v2529_v46 = vpop.f32.mrb[33].mxu0 }
 0x31b   : > { %v3442_v48 = vadd.f32 %v2529_v46, %v4852_v39  ;;  %v2531_v53 = vpop.f32.mrb[34].mxu0 }
 0x31c   : > { %v2606_v47 = vmul.f32 0.15, %v3441_v43  ;;  %v3443_v40 = vadd.f32 %v2531_v53, %v4849_v38  ;;  %v2533_v6 = vpop.f32.mrb[35].mxu0 }
 0x31d   : > { %v2607_v61 = vmul.f32 0.15, %v3442_v48  ;;  %v3444_v49 = vadd.f32 %v2533_v6, %v4852_v39 }
 0x31e   : > { %v2608_v62 = vmul.f32 0.15, %v3443_v40  ;;  %v2638_v36 = vmax.f32 %v3441_v43, %v2606_v47 }
 0x31f   : > { %v2609_v52 = vmul.f32 0.15, %v3444_v49  ;;  %v2639_v54 = vmax.f32 %v3442_v48, %v2607_v61 }
 0x320   : > { %v2640_v9 = vmax.f32 %v3443_v40, %v2608_v62 }
 0x321   : > { %v2641_v41 = vmax.f32 %v3444_v49, %v2609_v52  ;;  %v2537_v44 = vpop.f32.mrb[36].mxu0 }
 0x322   : > { %v2670_v12 = vpack.c.bf16 %v2640_v9, %v2638_v36  ;;  %v3445_v0 = vadd.f32 %v2537_v44, %v4849_v38  ;;  %v2539_v3 = vpop.f32.mrb[37].mxu0 }
 0x323   : > { %v3446_v5 = vadd.f32 %v2539_v3, %v4852_v39  ;;  %v2541_v63 = vpop.f32.mrb[38].mxu0  ;;  %v2671_v7 = vpack.c.bf16 %v2641_v41, %v2639_v54 }
 0x324   : > { %v2610_v8 = vmul.f32 0.15, %v3445_v0  ;;  %v3447_v13 = vadd.f32 %v2541_v63, %v4849_v38  ;;  %v2543_v11 = vpop.f32.mrb[39].mxu0 }
 0x325   : > { %v2611_v4 = vmul.f32 0.15, %v3446_v5  ;;  %v3448_v15 = vadd.f32 %v2543_v11, %v4852_v39  ;;  %2853 = vmatprep.mubr.bf16.mxu0 %v2671_v7 }
 0x326   : > { %v2612_v17 = vmul.f32 0.15, %v3447_v13  ;;  %2854 = vmatmul.mubr.bf16.vlgmr.msra.gmra.mrb[64].mxu0 %v2670_v12  ;;  %v2642_v57 = vmax.f32 %v3445_v0, %v2610_v8 }
 0x327   : > { %v2613_v19 = vmul.f32 0.15, %v3448_v15  ;;  %v2643_v16 = vmax.f32 %v3446_v5, %v2611_v4 }
 0x328   : > { %v2644_v14 = vmax.f32 %v3447_v13, %v2612_v17 }
 0x329   : > { %v2645_v25 = vmax.f32 %v3448_v15, %v2613_v19  ;;  %v2547_v28 = vpop.f32.mrb[40].mxu0 }
 0x32a   : > { %v3449_v55 = vadd.f32 %v2547_v28, %v4849_v38  ;;  %v2549_v59 = vpop.f32.mrb[41].mxu0  ;;  %v2672_v31 = vpack.c.bf16 %v2644_v14, %v2642_v57 }
 0x32b   : > { %v3450_v33 = vadd.f32 %v2549_v59, %v4852_v39  ;;  %v2551_v23 = vpop.f32.mrb[42].mxu0  ;;  %v2673_v21 = vpack.c.bf16 %v2645_v25, %v2643_v16 }
 0x32c   : > { %v2614_v30 = vmul.f32 0.15, %v3449_v55  ;;  %v3451_v20 = vadd.f32 %v2551_v23, %v4849_v38  ;;  %v2553_v22 = vpop.f32.mrb[43].mxu0 }
 0x32d   : > { %v2615_v50 = vmul.f32 0.15, %v3450_v33  ;;  %v3452_v1 = vadd.f32 %v2553_v22, %v4852_v39  ;;  %2861 = vmatprep.mubr.bf16.mxu0 %v2673_v21 }
 0x32e   : > { %v2616_v10 = vmul.f32 0.15, %v3451_v20  ;;  %2862 = vmatmul.mubr.bf16.gmra.mrb[68].mxu0 %v2672_v31  ;;  %v2646_v42 = vmax.f32 %v3449_v55, %v2614_v30 }
 0x32f   : > { %v2617_v60 = vmul.f32 0.15, %v3452_v1  ;;  %v2647_v56 = vmax.f32 %v3450_v33, %v2615_v50 }
 0x330   : > { %v2648_v18 = vmax.f32 %v3451_v20, %v2616_v10 }
 0x331   : > { %v2649_v24 = vmax.f32 %v3452_v1, %v2617_v60  ;;  %v2557_v34 = vpop.f32.mrb[44].mxu0 }
 0x332   : > { %v2674_v26 = vpack.c.bf16 %v2648_v18, %v2646_v42  ;;  %v3453_v27 = vadd.f32 %v2557_v34, %v4849_v38  ;;  %v2559_v51 = vpop.f32.mrb[45].mxu0 }
 0x333   : > { %v3454_v58 = vadd.f32 %v2559_v51, %v4852_v39  ;;  %v2561_v29 = vpop.f32.mrb[46].mxu0  ;;  %v2675_v32 = vpack.c.bf16 %v2649_v24, %v2647_v56 }
 0x334   : > { %v2618_v2 = vmul.f32 0.15, %v3453_v27  ;;  %v3455_v37 = vadd.f32 %v2561_v29, %v4849_v38  ;;  %v2563_v35 = vpop.f32.mrb[47].mxu0 }
 0x335   : > { %v2619_v45 = vmul.f32 0.15, %v3454_v58  ;;  %v3456_v43 = vadd.f32 %v2563_v35, %v4852_v39  ;;  %2869 = vmatprep.mubr.bf16.mxu1 %v2675_v32 }
 0x336   : > { %v2620_v46 = vmul.f32 0.15, %v3455_v37  ;;  %2870 = vmatmul.mubr.bf16.vlgmr.msra.gmra.mrb[96].mxu1 %v2674_v26  ;;  %v2650_v53 = vmax.f32 %v3453_v27, %v2618_v2 }
 0x337   : > { %v2621_v48 = vmul.f32 0.15, %v3456_v43  ;;  %v2651_v40 = vmax.f32 %v3454_v58, %v2619_v45 }
 0x338   : > { %v2652_v47 = vmax.f32 %v3455_v37, %v2620_v46 }
 0x339   : > { %v2653_v6 = vmax.f32 %v3456_v43, %v2621_v48  ;;  %v2567_v61 = vpop.f32.mrb[48].mxu0 }
 0x33a   : > { %v3457_v49 = vadd.f32 %v2567_v61, %v4849_v38  ;;  %v2569_v62 = vpop.f32.mrb[49].mxu0  ;;  %v2676_v52 = vpack.c.bf16 %v2652_v47, %v2650_v53 }
 0x33b   : > { %v3458_v36 = vadd.f32 %v2569_v62, %v4852_v39  ;;  %v2571_v9 = vpop.f32.mrb[50].mxu0  ;;  %v2677_v54 = vpack.c.bf16 %v2653_v6, %v2651_v40 }
 0x33c   : > { %v2622_v41 = vmul.f32 0.15, %v3457_v49  ;;  %v3459_v44 = vadd.f32 %v2571_v9, %v4849_v38  ;;  %v2573_v12 = vpop.f32.mrb[51].mxu0 }
 0x33d   : > { %v2623_v0 = vmul.f32 0.15, %v3458_v36  ;;  %v3460_v3 = vadd.f32 %v2573_v12, %v4852_v39  ;;  %2877 = vmatprep.mubr.bf16.mxu1 %v2677_v54 }
 0x33e   : > { %v2624_v5 = vmul.f32 0.15, %v3459_v44  ;;  %2878 = vmatmul.mubr.bf16.gmra.mrb[100].mxu1 %v2676_v52  ;;  %v2654_v7 = vmax.f32 %v3457_v49, %v2622_v41 }
 0x33f   : > { %v2625_v63 = vmul.f32 0.15, %v3460_v3  ;;  %v2655_v13 = vmax.f32 %v3458_v36, %v2623_v0 }
 0x340   : > { %v2656_v8 = vmax.f32 %v3459_v44, %v2624_v5 }
 0x341   : > { %v2657_v11 = vmax.f32 %v3460_v3, %v2625_v63  ;;  %v2577_v4 = vpop.f32.mrb[52].mxu0 }
 0x342   : > { %v3461_v15 = vadd.f32 %v2577_v4, %v4849_v38  ;;  %v2579_v17 = vpop.f32.mrb[53].mxu0  ;;  %v2678_v19 = vpack.c.bf16 %v2656_v8, %v2654_v7 }
 0x343   : > { %v3462_v57 = vadd.f32 %v2579_v17, %v4852_v39  ;;  %v2581_v14 = vpop.f32.mrb[54].mxu0  ;;  %v2679_v16 = vpack.c.bf16 %v2657_v11, %v2655_v13 }
 0x344   : > { %v2626_v25 = vmul.f32 0.15, %v3461_v15  ;;  %v3463_v28 = vadd.f32 %v2581_v14, %v4849_v38  ;;  %v2583_v55 = vpop.f32.mrb[55].mxu0 }
 0x345   : > { %v2627_v59 = vmul.f32 0.15, %v3462_v57  ;;  %v3464_v31 = vadd.f32 %v2583_v55, %v4852_v39  ;;  %2885 = vmatprep.mubr.bf16.mxu1 %v2679_v16 }
 0x346   : > { %v2628_v33 = vmul.f32 0.15, %v3463_v28  ;;  %2886 = vmatmul.mubr.bf16.gmra.mrb[104].mxu1 %v2678_v19  ;;  %v2658_v21 = vmax.f32 %v3461_v15, %v2626_v25 }
 0x347   : > { %v2629_v23 = vmul.f32 0.15, %v3464_v31  ;;  %v2659_v20 = vmax.f32 %v3462_v57, %v2627_v59  ;;  %v2950_v59 = vld [vmem:[%s4898_s24] sm:$0xff] }
 0x348   : > { %v2660_v30 = vmax.f32 %v3463_v28, %v2628_v33 }
 0x349   : > { %v2661_v22 = vmax.f32 %v3464_v31, %v2629_v23  ;;  %v2587_v50 = vpop.f32.mrb[56].mxu0 }
 0x34a   : > { %v3465_v1 = vadd.f32 %v2587_v50, %v4849_v38  ;;  %v2589_v10 = vpop.f32.mrb[57].mxu0  ;;  %v2680_v60 = vpack.c.bf16 %v2660_v30, %v2658_v21  ;;  %v2951_v30 = vld [vmem:[%s4898_s24 + $0x8] sm:$0xff] }
 0x34b   : > { %v3466_v42 = vadd.f32 %v2589_v10, %v4852_v39  ;;  %v2591_v18 = vpop.f32.mrb[58].mxu0  ;;  %v2681_v56 = vpack.c.bf16 %v2661_v22, %v2659_v20 }
 0x34c   : > { %v2630_v24 = vmul.f32 0.15, %v3465_v1  ;;  %v3467_v34 = vadd.f32 %v2591_v18, %v4849_v38  ;;  %v2593_v26 = vpop.f32.mrb[59].mxu0 }
 0x34d   : > { %v2631_v27 = vmul.f32 0.15, %v3466_v42  ;;  %v3468_v51 = vadd.f32 %v2593_v26, %v4852_v39  ;;  %2893 = vmatprep.mubr.bf16.mxu1 %v2681_v56 }
 0x34e   : > { %v2632_v58 = vmul.f32 0.15, %v3467_v34  ;;  %2894 = vmatmul.mubr.bf16.gmra.mrb[108].mxu1 %v2680_v60  ;;  %v2662_v32 = vmax.f32 %v3465_v1, %v2630_v24 }
 0x34f   : > { %v2633_v29 = vmul.f32 0.15, %v3468_v51  ;;  %v2663_v37 = vmax.f32 %v3466_v42, %v2631_v27 }
 0x350   : > { %v2664_v2 = vmax.f32 %v3467_v34, %v2632_v58  ;;  %v2952_v34 = vld [vmem:[%s4898_s24 + $0x10] sm:$0xff] }
 0x351   : > { %v2665_v35 = vmax.f32 %v3468_v51, %v2633_v29  ;;  %v2597_v45 = vpop.f32.mrb[60].mxu0  ;;  %v2953_v29 = vld [vmem:[%s4898_s24 + $0x18] sm:$0xff] }
 0x352   : > { %v3469_v43 = vadd.f32 %v2597_v45, %v4849_v38  ;;  %v2599_v46 = vpop.f32.mrb[61].mxu0  ;;  %v2682_v48 = vpack.c.bf16 %v2664_v2, %v2662_v32 }
 0x353   : > { %v3470_v53 = vadd.f32 %v2599_v46, %v4852_v39  ;;  %v2601_v47 = vpop.f32.mrb[62].mxu0  ;;  %v2683_v40 = vpack.c.bf16 %v2665_v35, %v2663_v37 }
 0x354   : > { %v2634_v6 = vmul.f32 0.15, %v3469_v43  ;;  %v3471_v61 = vadd.f32 %v2601_v47, %v4849_v38  ;;  %v2603_v49 = vpop.f32.mrb[63].mxu0  ;;  %v4889_v38 = vld [vmem:[%s4978_s9] ss:$0 sm:$0xff] }
 0x355   : > { %v2635_v62 = vmul.f32 0.15, %v3470_v53  ;;  %v3472_v52 = vadd.f32 %v2603_v49, %v4852_v39  ;;  %2901 = vmatprep.mubr.bf16.mxu1 %v2683_v40  ;;  %v2954_v40 = vld [vmem:[%s4898_s24 + $0x20] sm:$0xff] }
 0x356   : > { %v2636_v36 = vmul.f32 0.15, %v3471_v61  ;;  %2902 = vmatmul.mubr.bf16.gmra.mrb[112].mxu1 %v2682_v48  ;;  %v2666_v54 = vmax.f32 %v3469_v43, %v2634_v6 }
 0x357   : > { %v2637_v9 = vmul.f32 0.15, %v3472_v52  ;;  %v2667_v44 = vmax.f32 %v3470_v53, %v2635_v62 }
 0x358   : > { %v2668_v41 = vmax.f32 %v3471_v61, %v2636_v36 }
 0x359   : > { %v2669_v12 = vmax.f32 %v3472_v52, %v2637_v9  ;;  %v2955_v52 = vld [vmem:[%s4898_s24 + $0x28] sm:$0xff] }
 0x35a   : > { %v2684_v0 = vpack.c.bf16 %v2668_v41, %v2666_v54 }
 0x35b   : > { %v2685_v3 = vpack.c.bf16 %v2669_v12, %v2667_v44 }
 0x35d   : > { %2909 = vmatprep.mubr.bf16.mxu1 %v2685_v3 }
 0x35e   : > { %2910 = vmatmul.mubr.bf16.gmra.mrb[116].mxu1 %v2684_v0 }
 0x3f9   : > { %v3313_v5 = vpop.f32.mrb[64].mxu0 }
 0x3fa   : > { %v3314_v39 = vpop.f32.mrb[65].mxu0 }
 0x3fb   : > { %v3315_v63 = vadd.f32 %v3314_v39, %v3313_v5  ;;  %v3316_v7 = vpop.f32.mrb[66].mxu0 }
 0x3fc   : > { %v3317_v8 = vpop.f32.mrb[67].mxu0 }
 0x3fd   : > { %v2856_v13 = vadd.f32 %v3315_v63, %v4889_v38  ;;  %v3318_v11 = vadd.f32 %v3317_v8, %v3316_v7  ;;  %v2956_v63 = vld [vmem:[%s4898_s24 + $0x30] sm:$0xff] }
 0x3ff   : > { %3827 = vtanh.f32 %v2856_v13  ;;  %v2859_v4 = vadd.f32 %v3318_v11, %v4889_v38 }
 0x401   : > { %3829 = vtanh.f32 %v2859_v4  ;;  %v3319_v15 = vpop.f32.mrb[68].mxu0  ;;  %v2957_v4 = vld [vmem:[%s4898_s24 + $0x38] sm:$0xff] }
 0x402   : > { %v3320_v17 = vpop.f32.mrb[69].mxu0 }
 0x403   : > { %v3321_v19 = vadd.f32 %v3320_v17, %v3319_v15  ;;  %v3322_v57 = vpop.f32.mrb[70].mxu0 }
 0x404   : > { %v3323_v14 = vpop.f32.mrb[71].mxu0 }
 0x405   : > { %v2864_v16 = vadd.f32 %v3321_v19, %v4889_v38  ;;  %v3324_v25 = vadd.f32 %v3323_v14, %v3322_v57 }
 0x407   : > { %3831 = vtanh.f32 %v2864_v16  ;;  %v2867_v28 = vadd.f32 %v3324_v25, %v4889_v38 }
 0x409   : > { %v3828_v55 = vpop.eup %3827  ;;  %3833 = vtanh.f32 %v2867_v28  ;;  %v3325_v31 = vpop.f32.mrb[96].mxu1 }
 0x40a   : > { %v2934_v33 = vmul.f32 0.1, %v3828_v55  ;;  %v3326_v23 = vpop.f32.mrb[97].mxu1 }
 0x40b   : > { %v3830_v21 = vpop.eup %3829  ;;  %v3327_v20 = vadd.f32 %v3326_v23, %v3325_v31  ;;  %v3328_v22 = vpop.f32.mrb[98].mxu1  ;;  %v2958_v31 = vld [vmem:[%s4898_s24 + $0x40] sm:$0xff] }
 0x40c   : > { %v2966_v50 = vadd.f32 %v2950_v59, %v2934_v33  ;;  %v2935_v1 = vmul.f32 0.1, %v3830_v21  ;;  %v3329_v10 = vpop.f32.mrb[99].mxu1 }
 0x40d   : > { %v2872_v60 = vadd.f32 %v3327_v20, %v4889_v38  ;;  %v3330_v42 = vadd.f32 %v3329_v10, %v3328_v22  ;;  %v2959_v20 = vld [vmem:[%s4898_s24 + $0x48] sm:$0xff] }
 0x40e   : > { %2983 = vst.msk [vmem:[%s4905_s26] sm:$0xff] %vm2982_vm0, %v2966_v50  ;;  %v2967_v18 = vadd.f32 %v2951_v30, %v2935_v1 }
 0x40f   : > { %3835 = vtanh.f32 %v2872_v60  ;;  %v2875_v56 = vadd.f32 %v3330_v42, %v4889_v38 }
 0x410   : > { %2984 = vst.msk [vmem:[%s4905_s26 + $0x8] sm:$0xff] %vm2982_vm0, %v2967_v18 }
 0x411   : > { %v3832_v24 = vpop.eup %3831  ;;  %3837 = vtanh.f32 %v2875_v56  ;;  %v3331_v26 = vpop.f32.mrb[100].mxu1 }
 0x412   : > { %v2936_v27 = vmul.f32 0.1, %v3832_v24  ;;  %v3332_v51 = vpop.f32.mrb[101].mxu1 }
 0x413   : > { %v3834_v58 = vpop.eup %3833  ;;  %v3333_v32 = vadd.f32 %v3332_v51, %v3331_v26  ;;  %v3334_v2 = vpop.f32.mrb[102].mxu1  ;;  %v2960_v26 = vld [vmem:[%s4898_s24 + $0x50] sm:$0xff] }
 0x414   : > { %v2968_v37 = vadd.f32 %v2952_v34, %v2936_v27  ;;  %v2937_v35 = vmul.f32 0.1, %v3834_v58  ;;  %v3335_v45 = vpop.f32.mrb[103].mxu1 }
 0x415   : > { %v2880_v43 = vadd.f32 %v3333_v32, %v4889_v38  ;;  %v3336_v46 = vadd.f32 %v3335_v45, %v3334_v2  ;;  %v2961_v32 = vld [vmem:[%s4898_s24 + $0x58] sm:$0xff] }
 0x416   : > { %2985 = vst.msk [vmem:[%s4905_s26 + $0x10] sm:$0xff] %vm2982_vm0, %v2968_v37  ;;  %v2969_v48 = vadd.f32 %v2953_v29, %v2937_v35 }
 0x417   : > { %3839 = vtanh.f32 %v2880_v43  ;;  %v2883_v53 = vadd.f32 %v3336_v46, %v4889_v38 }
 0x418   : > { %2986 = vst.msk [vmem:[%s4905_s26 + $0x18] sm:$0xff] %vm2982_vm0, %v2969_v48 }
 0x419   : > { %v3836_v47 = vpop.eup %3835  ;;  %3841 = vtanh.f32 %v2883_v53  ;;  %v3337_v6 = vpop.f32.mrb[104].mxu1 }
 0x41a   : > { %v2938_v61 = vmul.f32 0.1, %v3836_v47  ;;  %v3338_v49 = vpop.f32.mrb[105].mxu1 }
 0x41b   : > { %v3838_v62 = vpop.eup %3837  ;;  %v3339_v36 = vadd.f32 %v3338_v49, %v3337_v6  ;;  %v3340_v9 = vpop.f32.mrb[106].mxu1  ;;  %v2962_v6 = vld [vmem:[%s4898_s24 + $0x60] sm:$0xff] }
 0x41c   : > { %v2970_v54 = vadd.f32 %v2954_v40, %v2938_v61  ;;  %v2939_v41 = vmul.f32 0.1, %v3838_v62  ;;  %v3341_v44 = vpop.f32.mrb[107].mxu1  ;;  %v2963_v62 = vld [vmem:[%s4898_s24 + $0x68] sm:$0xff] }
 0x41d   : > { %v2888_v12 = vadd.f32 %v3339_v36, %v4889_v38  ;;  %v3342_v0 = vadd.f32 %v3341_v44, %v3340_v9 }
 0x41e   : > { %2987 = vst.msk [vmem:[%s4905_s26 + $0x20] sm:$0xff] %vm2982_vm0, %v2970_v54  ;;  %v2971_v3 = vadd.f32 %v2955_v52, %v2939_v41 }
 0x41f   : > { %3843 = vtanh.f32 %v2888_v12  ;;  %v2891_v5 = vadd.f32 %v3342_v0, %v4889_v38  ;;  %v2965_v12 = vld [vmem:[%s4898_s24 + $0x78] sm:$0xff] }
 0x420   : > { %2988 = vst.msk [vmem:[%s4905_s26 + $0x28] sm:$0xff] %vm2982_vm0, %v2971_v3 }
 0x421   : > { %v3840_v39 = vpop.eup %3839  ;;  %3845 = vtanh.f32 %v2891_v5  ;;  %v3343_v7 = vpop.f32.mrb[108].mxu1 }
 0x422   : > { %v2940_v8 = vmul.f32 0.1, %v3840_v39  ;;  %v3344_v13 = vpop.f32.mrb[109].mxu1 }
 0x423   : > { %v3842_v11 = vpop.eup %3841  ;;  %v3345_v15 = vadd.f32 %v3344_v13, %v3343_v7  ;;  %v3346_v17 = vpop.f32.mrb[110].mxu1 }
 0x424   : > { %v2972_v19 = vadd.f32 %v2956_v63, %v2940_v8  ;;  %v2941_v57 = vmul.f32 0.1, %v3842_v11  ;;  %v3347_v14 = vpop.f32.mrb[111].mxu1 }
 0x425   : > { %v2896_v16 = vadd.f32 %v3345_v15, %v4889_v38  ;;  %v3348_v25 = vadd.f32 %v3347_v14, %v3346_v17 }
 0x426   : > { %2989 = vst.msk [vmem:[%s4905_s26 + $0x30] sm:$0xff] %vm2982_vm0, %v2972_v19  ;;  %v2973_v28 = vadd.f32 %v2957_v4, %v2941_v57 }
 0x427   : > { %3847 = vtanh.f32 %v2896_v16  ;;  %v2899_v55 = vadd.f32 %v3348_v25, %v4889_v38 }
 0x428   : > { %2990 = vst.msk [vmem:[%s4905_s26 + $0x38] sm:$0xff] %vm2982_vm0, %v2973_v28 }
 0x429   : > { %v3844_v59 = vpop.eup %3843  ;;  %3849 = vtanh.f32 %v2899_v55  ;;  %v3349_v33 = vpop.f32.mrb[112].mxu1 }
 0x42a   : > { %v2942_v23 = vmul.f32 0.1, %v3844_v59  ;;  %v3350_v21 = vpop.f32.mrb[113].mxu1 }
 0x42b   : > { %v3846_v30 = vpop.eup %3845  ;;  %v3351_v22 = vadd.f32 %v3350_v21, %v3349_v33  ;;  %v3352_v50 = vpop.f32.mrb[114].mxu1 }
 0x42c   : > { %v2974_v1 = vadd.f32 %v2958_v31, %v2942_v23  ;;  %v2943_v10 = vmul.f32 0.1, %v3846_v30  ;;  %v3353_v60 = vpop.f32.mrb[115].mxu1 }
 0x42d   : > { %v2904_v42 = vadd.f32 %v3351_v22, %v4889_v38  ;;  %v3354_v18 = vadd.f32 %v3353_v60, %v3352_v50 }
 0x42e   : > { %2991 = vst.msk [vmem:[%s4905_s26 + $0x40] sm:$0xff] %vm2982_vm0, %v2974_v1  ;;  %v2975_v56 = vadd.f32 %v2959_v20, %v2943_v10 }
 0x42f   : > { %3851 = vtanh.f32 %v2904_v42  ;;  %v2907_v24 = vadd.f32 %v3354_v18, %v4889_v38 }
 0x430   : > { %2992 = vst.msk [vmem:[%s4905_s26 + $0x48] sm:$0xff] %vm2982_vm0, %v2975_v56 }
 0x431   : > { %v3848_v34 = vpop.eup %3847  ;;  %3853 = vtanh.f32 %v2907_v24  ;;  %v3355_v27 = vpop.f32.mrb[116].mxu1 }
 0x432   : > { %v2944_v51 = vmul.f32 0.1, %v3848_v34  ;;  %v3356_v58 = vpop.f32.mrb[117].mxu1 }
 0x433   : > { %v3850_v29 = vpop.eup %3849  ;;  %v3357_v2 = vadd.f32 %v3356_v58, %v3355_v27  ;;  %v3358_v37 = vpop.f32.mrb[118].mxu1 }
 0x434   : > { %v2976_v35 = vadd.f32 %v2960_v26, %v2944_v51  ;;  %v2945_v45 = vmul.f32 0.1, %v3850_v29  ;;  %v3359_v43 = vpop.f32.mrb[119].mxu1 }
 0x435   : > { %v2912_v46 = vadd.f32 %v3357_v2, %v4889_v38  ;;  %v3360_v48 = vadd.f32 %v3359_v43, %v3358_v37 }
 0x436   : > { %2993 = vst.msk [vmem:[%s4905_s26 + $0x50] sm:$0xff] %vm2982_vm0, %v2976_v35  ;;  %v2977_v53 = vadd.f32 %v2961_v32, %v2945_v45 }
 0x437   : > { %3855 = vtanh.f32 %v2912_v46  ;;  %v2915_v47 = vadd.f32 %v3360_v48, %v4889_v38  ;;  %v2964_v38 = vld [vmem:[%s4898_s24 + $0x70] sm:$0xff] }
 0x438   : > { %2994 = vst.msk [vmem:[%s4905_s26 + $0x58] sm:$0xff] %vm2982_vm0, %v2977_v53 }
 0x439   : > { %v3852_v40 = vpop.eup %3851  ;;  %3857 = vtanh.f32 %v2915_v47 }
 0x43a   : > { %v2946_v61 = vmul.f32 0.1, %v3852_v40 }
 0x43b   : > { %v3854_v49 = vpop.eup %3853 }
 0x43c   : > { %v2978_v52 = vadd.f32 %v2962_v6, %v2946_v61  ;;  %v2947_v36 = vmul.f32 0.1, %v3854_v49 }
 0x43e   : > { %2995 = vst.msk [vmem:[%s4905_s26 + $0x60] sm:$0xff] %vm2982_vm0, %v2978_v52  ;;  %v2979_v9 = vadd.f32 %v2963_v62, %v2947_v36 }
 0x440   : > { %2996 = vst.msk [vmem:[%s4905_s26 + $0x68] sm:$0xff] %vm2982_vm0, %v2979_v9 }
 0x441   : > { %v3856_v54 = vpop.eup %3855 }
 0x442   : > { %v2948_v41 = vmul.f32 0.1, %v3856_v54 }
 0x443   : > { %v3858_v44 = vpop.eup %3857 }
 0x444   : > { %v2980_v0 = vadd.f32 %v2964_v38, %v2948_v41  ;;  %v2949_v3 = vmul.f32 0.1, %v3858_v44 }
 0x446   : > { %2997 = vst.msk [vmem:[%s4905_s26 + $0x70] sm:$0xff] %vm2982_vm0, %v2980_v0  ;;  %v2981_v5 = vadd.f32 %v2965_v12, %v2949_v3 }
 0x448   : > { %2998 = vst.msk [vmem:[%s4905_s26 + $0x78] sm:$0xff] %vm2982_vm0, %v2981_v5 }
 0x449 PF: > { %s20_s13 = sadd.s32 1, %s3865_s13  }
 0x44a   : > { %p17_p4 = scmp.ge.s32.totalorder %s20_s13, 4  }
 0x44c   :  { %19 = sbr.rel (!%p17_p4) target bundleno = 1 (0x1), region = 93 }

</bundles_post_ra>
